<compile_context>
chip_gen: v6e
topology: v6e:2x2x1
jax: 0.10.0
libtpu: 0.0.40
codegen_flags: <defaults>
</compile_context>

<pallas_src>
import math
from functools import partial

import jax
import jax.numpy as jnp
from jax.experimental import pallas as pl
from jax.experimental.pallas import tpu as pltpu

GRID_SIZE = 5
SPLINE_ORDER = 3
GRID_RANGE = (-1.0, 1.0)
LN_EPS = 1e-5


# --------------------------------------------------------------------------
# Kernel
# --------------------------------------------------------------------------
def _kan_kernel(xt_ref, grid_ref, invd1_ref, invd2_ref, wb_ref, ws_ref,
                gamma_ref, beta_ref, alpha_ref, out_ref):
    fin = xt_ref.shape[0]                              # padded Fin
    num_knots = grid_ref.shape[0]
    num_coef = num_knots - 1 - SPLINE_ORDER            # grid_size + spline_order

    xt = xt_ref[...].astype(jnp.float32)               # (Fin, B), lane-dense B
    g = grid_ref[...].astype(jnp.float32)              # (G, Fin, 1)

    # ---- base branch: exact (erf) GELU (matches torch.nn.GELU default) ----
    inv_sqrt2 = jnp.float32(0.7071067811865476)
    base_act = 0.5 * xt * (1.0 + jax.lax.erf(xt * inv_sqrt2))

    # ---- spline branch: Cox-de-Boor recursion, knot axis leading ----------
    # Denominators are precomputed outside the kernel (knot-only constants),
    # so each level is multiplies + adds only.
    x3 = xt[None, :, :]                                 # (1, Fin, B)
    bases = jnp.logical_and(x3 >= g[:-1], x3 < g[1:]).astype(jnp.float32)
    for k in range(1, SPLINE_ORDER + 1):
        nk = num_knots - 1 - k
        left = g[:-(k + 1)]                             # (nk, Fin, 1)
        inv_delta = invd1_ref[k - 1, :nk]               # (nk, Fin, 1)
        inv_den2 = invd2_ref[k - 1, :nk]                # (nk, Fin, 1)
        term1 = (x3 - left) * inv_delta * bases[:-1]
        term2 = (g[k + 1:] - x3) * inv_den2 * bases[1:]
        bases = term1 + term2                           # (nk, Fin, B)

    # (num_coef, Fin, B) -> (num_coef*Fin, B); Fin is a sublane multiple so this
    # is a cheap leading-dim merge (no tile-crossing relayout).
    bases2d = bases.reshape(num_coef * fin, -1)

    # ---- two MXU dots (no staging scratch): base + spline contributions ---
    y = jnp.dot(wb_ref[...], base_act.astype(wb_ref.dtype),
                preferred_element_type=jnp.float32)
    y = y + jnp.dot(ws_ref[...], bases2d.astype(ws_ref.dtype),
                    preferred_element_type=jnp.float32)  # (Fout, B)

    # ---- LayerNorm over output_features (sublane axis) + PReLU ------------
    gamma = gamma_ref[...].astype(jnp.float32)          # (Fout, 1)
    beta = beta_ref[...].astype(jnp.float32)            # (Fout, 1)
    alpha = alpha_ref[0]                                # PReLU slope (SMEM scalar)
    mean = jnp.mean(y, axis=0, keepdims=True)
    var = jnp.mean(jnp.square(y - mean), axis=0, keepdims=True)
    y_ln = (y - mean) * jax.lax.rsqrt(var + LN_EPS) * gamma + beta
    out = jnp.where(y_ln >= 0, y_ln, alpha * y_ln)
    out_ref[...] = out.astype(out_ref.dtype)


# --------------------------------------------------------------------------
# Wrapper
# --------------------------------------------------------------------------
def _round_up(v, m):
    return ((v + m - 1) // m) * m


def _precompute_inv_denoms(grid_pad):
    """grid_pad: (Fin_pad, G). Returns two (K, G-2, Fin_pad, 1) f32 arrays."""
    fin_pad, g_knots = grid_pad.shape
    n1 = g_knots - 2
    invd1 = jnp.ones((SPLINE_ORDER, n1, fin_pad, 1), jnp.float32)
    invd2 = jnp.ones((SPLINE_ORDER, n1, fin_pad, 1), jnp.float32)
    gT = grid_pad.T                                      # (G, Fin_pad)
    for k in range(1, SPLINE_ORDER + 1):
        nk = g_knots - 1 - k
        left = gT[:-(k + 1)]
        right = gT[k:-1]
        delta = jnp.where(right == left, jnp.ones_like(right), right - left)
        d1 = 1.0 / delta
        d2 = 1.0 / (gT[k + 1:] - gT[1:-k])               # matches reference (no guard)
        invd1 = invd1.at[k - 1, :nk, :, 0].set(d1)
        invd2 = invd2.at[k - 1, :nk, :, 0].set(d2)
    return invd1, invd2


@partial(jax.jit, static_argnames=("tile_b", "compute_dtype"))
def kan_layer(x, grid, base_w, spline_w, gamma, beta, alpha, *,
              tile_b=512, compute_dtype=jnp.float32):
    batch, fin = x.shape
    fout, _, num_coef = spline_w.shape
    g_knots = grid.shape[1]

    itemsize = jnp.dtype(compute_dtype).itemsize
    fin_align = 8 if itemsize == 4 else 16               # sublane-tile alignment
    fin_pad = _round_up(fin, fin_align)
    cs = fin_pad * num_coef                               # spline contraction depth

    # --- v7x-aware tile sizing (64 MiB per-TC VMEM budget) ------------------
    tile_b = max(128, _round_up(min(tile_b, _round_up(batch, 128)), 128))

    def vmem_need(tb):
        per_tile = (2 * fin_pad * tb * itemsize           # x^T tile, double-buffered
                    + 2 * fout * tb * 4                    # output tile, double-buffered
                    + 3 * g_knots * fin_pad * tb * 4)      # recursion temporaries
        resident = 2 * (fout * (fin_pad + cs) * itemsize   # weights
                        + g_knots * fin_pad * 4            # knots
                        + 2 * SPLINE_ORDER * (g_knots - 2) * fin_pad * 4)
        return per_tile + resident + (1 << 20)

    VMEM_BUDGET = 40 * 1024 * 1024                         # safe on v7x (64 MiB phys)
    while tile_b > 128 and vmem_need(tile_b) > VMEM_BUDGET:
        tile_b -= 128
    b_pad = _round_up(batch, tile_b)

    # --- layout plumbing in XLA (outside the kernel) ------------------------
    xt = jnp.pad(x, ((0, b_pad - batch), (0, fin_pad - fin))).T.astype(compute_dtype)
    if fin_pad > fin:                                      # replicate a valid knot row
        grid_pad = jnp.concatenate(
            [grid, jnp.broadcast_to(grid[:1], (fin_pad - fin, g_knots))], axis=0)
    else:
        grid_pad = grid
    grid_t = grid_pad.T[:, :, None].astype(jnp.float32)    # (G, Fin_pad, 1)
    invd1, invd2 = _precompute_inv_denoms(grid_pad)

    wb = jnp.pad(base_w, ((0, 0), (0, fin_pad - fin))).astype(compute_dtype)
    ws = jnp.transpose(spline_w, (0, 2, 1))                # (Fout, nc, Fin)
    ws = jnp.pad(ws, ((0, 0), (0, 0), (0, fin_pad - fin)))
    ws = ws.reshape(fout, cs).astype(compute_dtype)        # row layout matches bases2d
    gamma2 = gamma.reshape(fout, 1).astype(jnp.float32)
    beta2 = beta.reshape(fout, 1).astype(jnp.float32)
    alpha1 = jnp.reshape(alpha, (1,)).astype(jnp.float32)

    # --- advisory cost hint for the XLA scheduler ---------------------------
    flops = (2 * fout * (fin_pad + cs) * b_pad             # two MXU dots
             + 12 * SPLINE_ORDER * g_knots * fin_pad * b_pad)  # recursion VPU work
    bytes_accessed = (fin_pad * b_pad * itemsize + fout * b_pad * 4
                      + fout * (fin_pad + cs) * itemsize
                      + 3 * g_knots * fin_pad * 4)
    cost = pl.CostEstimate(flops=int(flops),
                           transcendentals=int(fin_pad * b_pad),
                           bytes_accessed=int(bytes_accessed))

    const4 = lambda i: (0, 0, 0, 0)
    const2 = lambda i: (0, 0)
    # NOTE: on v7x with large Fin/Fout, add pipeline_mode=pl.Buffered(1) to the
    # constant-index specs below to drop their duplicate pipeline buffer.
    out_t = pl.pallas_call(
        _kan_kernel,
        out_shape=jax.ShapeDtypeStruct((fout, b_pad), jnp.float32),
        grid=(b_pad // tile_b,),
        in_specs=[
            pl.BlockSpec((fin_pad, tile_b), lambda i: (0, i)),           # x^T tile
            pl.BlockSpec((g_knots, fin_pad, 1), lambda i: (0, 0, 0)),    # knots
            pl.BlockSpec((SPLINE_ORDER, g_knots - 2, fin_pad, 1), const4),  # 1/delta
            pl.BlockSpec((SPLINE_ORDER, g_knots - 2, fin_pad, 1), const4),  # 1/denom2
            pl.BlockSpec((fout, fin_pad), const2),                        # base weight
            pl.BlockSpec((fout, cs), const2),                             # spline weight
            pl.BlockSpec((fout, 1), const2),                              # LN gamma
            pl.BlockSpec((fout, 1), const2),                              # LN beta
            pl.BlockSpec((1,), lambda i: (0,),
                         memory_space=pltpu.MemorySpace.SMEM),            # PReLU alpha
        ],
        out_specs=pl.BlockSpec((fout, tile_b), lambda i: (0, i)),
        compiler_params=pltpu.CompilerParams(
            dimension_semantics=("parallel",),
            vmem_limit_bytes=int(max(32 << 20, min(2 * vmem_need(tile_b), 48 << 20))),
        ),
        cost_estimate=cost,
    )(xt, grid_t, invd1, invd2, wb, ws, gamma2, beta2, alpha1)

    return out_t.T[:batch]                                 # (B, Fout)


# --------------------------------------------------------------------------
# Params / reference
# --------------------------------------------------------------------------
def init_params(key, in_features, out_features):
    """Deterministic synthetic init mirroring KANLayer.__init__ shapes."""
    k1, k2 = jax.random.split(key)
    num_coef = GRID_SIZE + SPLINE_ORDER
    b_base = math.sqrt(3.0 / in_features)                  # kaiming_uniform, 'linear'
    base_w = jax.random.uniform(k1, (out_features, in_features), jnp.float32,
                                -b_base, b_base)
    b_sp = math.sqrt(3.0 / (in_features * num_coef))
    spline_w = jax.random.uniform(k2, (out_features, in_features, num_coef),
                                  jnp.float32, -b_sp, b_sp)
    h = (GRID_RANGE[1] - GRID_RANGE[0]) / GRID_SIZE
    grid_1d = jnp.linspace(GRID_RANGE[0] - h * SPLINE_ORDER,
                           GRID_RANGE[1] + h * SPLINE_ORDER,
                           GRID_SIZE + 2 * SPLINE_ORDER + 1, dtype=jnp.float32)
    grid = jnp.broadcast_to(grid_1d, (in_features, grid_1d.shape[0]))
    gamma = jnp.ones((out_features,), jnp.float32)          # LayerNorm weight
    beta = jnp.zeros((out_features,), jnp.float32)          # LayerNorm bias
    alpha = jnp.float32(0.25)                               # PReLU default slope
    return grid, base_w, spline_w, gamma, beta, alpha


def kan_layer_ref(x, grid, base_w, spline_w, gamma, beta, alpha):
    """Pure-JAX reference mirroring the PyTorch forward (for verification)."""
    base_act = 0.5 * x * (1.0 + jax.lax.erf(x / jnp.sqrt(jnp.float32(2.0))))
    base_out = base_act @ base_w.T
    x_uns = x[:, :, None]
    bases = jnp.logical_and(x_uns >= grid[:, :-1],
                            x_uns < grid[:, 1:]).astype(x.dtype)
    for k in range(1, SPLINE_ORDER + 1):
        left = grid[:, :-(k + 1)]
        right = grid[:, k:-1]
        delta = jnp.where(right == left, jnp.ones_like(right), right - left)
        bases = ((x_uns - left) / delta * bases[:, :, :-1] +
                 (grid[:, k + 1:] - x_uns) /
                 (grid[:, k + 1:] - grid[:, 1:-k]) * bases[:, :, 1:])
    spline_out = bases.reshape(x.shape[0], -1) @ spline_w.reshape(
        spline_w.shape[0], -1).T
    y = base_out + spline_out
    mean = jnp.mean(y, axis=-1, keepdims=True)
    var = jnp.mean(jnp.square(y - mean), axis=-1, keepdims=True)
    y_ln = (y - mean) * jax.lax.rsqrt(var + LN_EPS) * gamma + beta
    return jnp.where(y_ln >= 0, y_ln, alpha * y_ln)


if __name__ == "__main__":
    # Case 1: Fin already sublane-aligned, single large batch tile.
    batch, in_features, out_features = 512, 8, 16
    kx, kp = jax.random.split(jax.random.PRNGKey(0))
    x = jax.random.uniform(kx, (batch, in_features), jnp.float32, -1.0, 1.0)
    params = init_params(kp, in_features, out_features)

    out = jax.block_until_ready(kan_layer(x, *params, tile_b=512))
    ref = kan_layer_ref(x, *params)
    assert out.shape == (batch, out_features)
    err = jnp.max(jnp.abs(out - ref))
    assert jnp.allclose(out, ref, atol=1e-4, rtol=1e-4), f"max abs err {err}"

    # Case 2: exercises Fin padding (fin % 8 != 0), batch padding and a
    # multi-step batch grid.
    b2, fin2, fout2 = 384, 5, 24
    kx2, kp2 = jax.random.split(jax.random.PRNGKey(1))
    x2 = jax.random.uniform(kx2, (b2, fin2), jnp.float32, -1.0, 1.0)
    params2 = init_params(kp2, fin2, fout2)

    out2 = jax.block_until_ready(kan_layer(x2, *params2, tile_b=256))
    ref2 = kan_layer_ref(x2, *params2)
    assert out2.shape == (b2, fout2)
    err2 = jnp.max(jnp.abs(out2 - ref2))
    assert jnp.allclose(out2, ref2, atol=1e-4, rtol=1e-4), f"max abs err {err2}"

    print("KERNEL_OK")
</pallas_src>

<mosaic_0001>
module attributes {stable_mosaic.version = 11 : i64} {
  func.func @_kan_kernel(%arg0: i32, %arg1: memref<8x512xf32, #tpu.memory_space<vmem>>, %arg2: memref<12x8x1xf32, #tpu.memory_space<vmem>>, %arg3: memref<3x10x8x1xf32, #tpu.memory_space<vmem>>, %arg4: memref<3x10x8x1xf32, #tpu.memory_space<vmem>>, %arg5: memref<16x8xf32, #tpu.memory_space<vmem>>, %arg6: memref<16x64xf32, #tpu.memory_space<vmem>>, %arg7: memref<16x1xf32, #tpu.memory_space<vmem>>, %arg8: memref<16x1xf32, #tpu.memory_space<vmem>>, %arg9: memref<1xf32, #tpu.memory_space<smem>>, %arg10: memref<16x512xf32, #tpu.memory_space<vmem>>) attributes {dimension_semantics = [#tpu.dimension_semantics<parallel>], iteration_bounds = array<i64: 1>, scalar_prefetch = 0 : i64, scratch_operands = 0 : i64, tpu.core_type = #tpu.core_type<tc>, window_params = [{transform_indices = @transform_0, window_bounds = array<i64: 8, 512>}, {pipeline_mode = #tpu.pipeline_mode<synchronous>, transform_indices = @transform_1, window_bounds = array<i64: 12, 8, 1>}, {pipeline_mode = #tpu.pipeline_mode<synchronous>, transform_indices = @transform_2, window_bounds = array<i64: 3, 10, 8, 1>}, {pipeline_mode = #tpu.pipeline_mode<synchronous>, transform_indices = @transform_3, window_bounds = array<i64: 3, 10, 8, 1>}, {pipeline_mode = #tpu.pipeline_mode<synchronous>, transform_indices = @transform_4, window_bounds = array<i64: 16, 8>}, {pipeline_mode = #tpu.pipeline_mode<synchronous>, transform_indices = @transform_5, window_bounds = array<i64: 16, 64>}, {pipeline_mode = #tpu.pipeline_mode<synchronous>, transform_indices = @transform_6, window_bounds = array<i64: 16, 1>}, {pipeline_mode = #tpu.pipeline_mode<synchronous>, transform_indices = @transform_7, window_bounds = array<i64: 16, 1>}, {transform_indices = @transform_8, window_bounds = array<i64: 1>}, {transform_indices = @transform_9, window_bounds = array<i64: 16, 512>}]} {
    %c0 = arith.constant 0 : index
    %c0_0 = arith.constant 0 : index
    %0 = vector.load %arg1[%c0, %c0_0] : memref<8x512xf32, #tpu.memory_space<vmem>>, vector<8x512xf32>
    %c0_1 = arith.constant 0 : index
    %c0_2 = arith.constant 0 : index
    %c0_3 = arith.constant 0 : index
    %1 = vector.load %arg2[%c0_1, %c0_2, %c0_3] : memref<12x8x1xf32, #tpu.memory_space<vmem>>, vector<12x8x1xf32>
    %cst = arith.constant 5.000000e-01 : f32
    %2 = vector.broadcast %cst : f32 to vector<8x512xf32>
    %3 = arith.mulf %2, %0 : vector<8x512xf32>
    %cst_4 = arith.constant 0.707106769 : f32
    %4 = vector.broadcast %cst_4 : f32 to vector<8x512xf32>
    %5 = arith.mulf %0, %4 : vector<8x512xf32>
    %6 = math.erf %5 : vector<8x512xf32>
    %cst_5 = arith.constant 1.000000e+00 : f32
    %7 = vector.broadcast %cst_5 : f32 to vector<8x512xf32>
    %8 = arith.addf %7, %6 : vector<8x512xf32>
    %9 = arith.mulf %3, %8 : vector<8x512xf32>
    %10 = vector.shape_cast %0 : vector<8x512xf32> to vector<1x8x512xf32>
    %11 = vector.extract_strided_slice %1 {offsets = [0, 0, 0], sizes = [11, 8, 1], strides = [1, 1, 1]} : vector<12x8x1xf32> to vector<11x8x1xf32>
    %12 = vector.broadcast %10 : vector<1x8x512xf32> to vector<11x8x512xf32>
    %13 = vector.broadcast %11 : vector<11x8x1xf32> to vector<11x8x512xf32>
    %14 = arith.cmpf oge, %12, %13 : vector<11x8x512xf32>
    %15 = vector.extract_strided_slice %1 {offsets = [1, 0, 0], sizes = [11, 8, 1], strides = [1, 1, 1]} : vector<12x8x1xf32> to vector<11x8x1xf32>
    %16 = vector.broadcast %10 : vector<1x8x512xf32> to vector<11x8x512xf32>
    %17 = vector.broadcast %15 : vector<11x8x1xf32> to vector<11x8x512xf32>
    %18 = arith.cmpf olt, %16, %17 : vector<11x8x512xf32>
    %19 = arith.andi %14, %18 : vector<11x8x512xi1>
    %20 = arith.extui %19 : vector<11x8x512xi1> to vector<11x8x512xi32>
    %21 = arith.sitofp %20 : vector<11x8x512xi32> to vector<11x8x512xf32>
    %22 = vector.extract_strided_slice %1 {offsets = [0, 0, 0], sizes = [10, 8, 1], strides = [1, 1, 1]} : vector<12x8x1xf32> to vector<10x8x1xf32>
    %c0_6 = arith.constant 0 : index
    %c0_7 = arith.constant 0 : index
    %c0_8 = arith.constant 0 : index
    %c0_9 = arith.constant 0 : index
    %23 = vector.load %arg3[%c0_6, %c0_7, %c0_8, %c0_9] : memref<3x10x8x1xf32, #tpu.memory_space<vmem>>, vector<1x10x8x1xf32>
    %24 = vector.shape_cast %23 : vector<1x10x8x1xf32> to vector<10x8x1xf32>
    %c0_10 = arith.constant 0 : index
    %c0_11 = arith.constant 0 : index
    %c0_12 = arith.constant 0 : index
    %c0_13 = arith.constant 0 : index
    %25 = vector.load %arg4[%c0_10, %c0_11, %c0_12, %c0_13] : memref<3x10x8x1xf32, #tpu.memory_space<vmem>>, vector<1x10x8x1xf32>
    %26 = vector.shape_cast %25 : vector<1x10x8x1xf32> to vector<10x8x1xf32>
    %27 = vector.broadcast %10 : vector<1x8x512xf32> to vector<10x8x512xf32>
    %28 = vector.broadcast %22 : vector<10x8x1xf32> to vector<10x8x512xf32>
    %29 = arith.subf %27, %28 : vector<10x8x512xf32>
    %30 = vector.broadcast %24 : vector<10x8x1xf32> to vector<10x8x512xf32>
    %31 = arith.mulf %29, %30 : vector<10x8x512xf32>
    %32 = vector.extract_strided_slice %21 {offsets = [0, 0, 0], sizes = [10, 8, 512], strides = [1, 1, 1]} : vector<11x8x512xf32> to vector<10x8x512xf32>
    %33 = arith.mulf %31, %32 : vector<10x8x512xf32>
    %34 = vector.extract_strided_slice %1 {offsets = [2, 0, 0], sizes = [10, 8, 1], strides = [1, 1, 1]} : vector<12x8x1xf32> to vector<10x8x1xf32>
    %35 = vector.broadcast %34 : vector<10x8x1xf32> to vector<10x8x512xf32>
    %36 = vector.broadcast %10 : vector<1x8x512xf32> to vector<10x8x512xf32>
    %37 = arith.subf %35, %36 : vector<10x8x512xf32>
    %38 = vector.broadcast %26 : vector<10x8x1xf32> to vector<10x8x512xf32>
    %39 = arith.mulf %37, %38 : vector<10x8x512xf32>
    %40 = vector.extract_strided_slice %21 {offsets = [1, 0, 0], sizes = [10, 8, 512], strides = [1, 1, 1]} : vector<11x8x512xf32> to vector<10x8x512xf32>
    %41 = arith.mulf %39, %40 : vector<10x8x512xf32>
    %42 = arith.addf %33, %41 : vector<10x8x512xf32>
    %43 = vector.extract_strided_slice %1 {offsets = [0, 0, 0], sizes = [9, 8, 1], strides = [1, 1, 1]} : vector<12x8x1xf32> to vector<9x8x1xf32>
    %c1 = arith.constant 1 : index
    %c0_14 = arith.constant 0 : index
    %c0_15 = arith.constant 0 : index
    %c0_16 = arith.constant 0 : index
    %44 = vector.load %arg3[%c1, %c0_14, %c0_15, %c0_16] : memref<3x10x8x1xf32, #tpu.memory_space<vmem>>, vector<1x9x8x1xf32>
    %45 = vector.shape_cast %44 : vector<1x9x8x1xf32> to vector<9x8x1xf32>
    %c1_17 = arith.constant 1 : index
    %c0_18 = arith.constant 0 : index
    %c0_19 = arith.constant 0 : index
    %c0_20 = arith.constant 0 : index
    %46 = vector.load %arg4[%c1_17, %c0_18, %c0_19, %c0_20] : memref<3x10x8x1xf32, #tpu.memory_space<vmem>>, vector<1x9x8x1xf32>
    %47 = vector.shape_cast %46 : vector<1x9x8x1xf32> to vector<9x8x1xf32>
    %48 = vector.broadcast %10 : vector<1x8x512xf32> to vector<9x8x512xf32>
    %49 = vector.broadcast %43 : vector<9x8x1xf32> to vector<9x8x512xf32>
    %50 = arith.subf %48, %49 : vector<9x8x512xf32>
    %51 = vector.broadcast %45 : vector<9x8x1xf32> to vector<9x8x512xf32>
    %52 = arith.mulf %50, %51 : vector<9x8x512xf32>
    %53 = vector.extract_strided_slice %42 {offsets = [0, 0, 0], sizes = [9, 8, 512], strides = [1, 1, 1]} : vector<10x8x512xf32> to vector<9x8x512xf32>
    %54 = arith.mulf %52, %53 : vector<9x8x512xf32>
    %55 = vector.extract_strided_slice %1 {offsets = [3, 0, 0], sizes = [9, 8, 1], strides = [1, 1, 1]} : vector<12x8x1xf32> to vector<9x8x1xf32>
    %56 = vector.broadcast %55 : vector<9x8x1xf32> to vector<9x8x512xf32>
    %57 = vector.broadcast %10 : vector<1x8x512xf32> to vector<9x8x512xf32>
    %58 = arith.subf %56, %57 : vector<9x8x512xf32>
    %59 = vector.broadcast %47 : vector<9x8x1xf32> to vector<9x8x512xf32>
    %60 = arith.mulf %58, %59 : vector<9x8x512xf32>
    %61 = vector.extract_strided_slice %42 {offsets = [1, 0, 0], sizes = [9, 8, 512], strides = [1, 1, 1]} : vector<10x8x512xf32> to vector<9x8x512xf32>
    %62 = arith.mulf %60, %61 : vector<9x8x512xf32>
    %63 = arith.addf %54, %62 : vector<9x8x512xf32>
    %64 = vector.extract_strided_slice %1 {offsets = [0, 0, 0], sizes = [8, 8, 1], strides = [1, 1, 1]} : vector<12x8x1xf32> to vector<8x8x1xf32>
    %c2 = arith.constant 2 : index
    %c0_21 = arith.constant 0 : index
    %c0_22 = arith.constant 0 : index
    %c0_23 = arith.constant 0 : index
    %65 = vector.load %arg3[%c2, %c0_21, %c0_22, %c0_23] : memref<3x10x8x1xf32, #tpu.memory_space<vmem>>, vector<1x8x8x1xf32>
    %66 = vector.shape_cast %65 : vector<1x8x8x1xf32> to vector<8x8x1xf32>
    %c2_24 = arith.constant 2 : index
    %c0_25 = arith.constant 0 : index
    %c0_26 = arith.constant 0 : index
    %c0_27 = arith.constant 0 : index
    %67 = vector.load %arg4[%c2_24, %c0_25, %c0_26, %c0_27] : memref<3x10x8x1xf32, #tpu.memory_space<vmem>>, vector<1x8x8x1xf32>
    %68 = vector.shape_cast %67 : vector<1x8x8x1xf32> to vector<8x8x1xf32>
    %69 = vector.broadcast %10 : vector<1x8x512xf32> to vector<8x8x512xf32>
    %70 = vector.broadcast %64 : vector<8x8x1xf32> to vector<8x8x512xf32>
    %71 = arith.subf %69, %70 : vector<8x8x512xf32>
    %72 = vector.broadcast %66 : vector<8x8x1xf32> to vector<8x8x512xf32>
    %73 = arith.mulf %71, %72 : vector<8x8x512xf32>
    %74 = vector.extract_strided_slice %63 {offsets = [0, 0, 0], sizes = [8, 8, 512], strides = [1, 1, 1]} : vector<9x8x512xf32> to vector<8x8x512xf32>
    %75 = arith.mulf %73, %74 : vector<8x8x512xf32>
    %76 = vector.extract_strided_slice %1 {offsets = [4, 0, 0], sizes = [8, 8, 1], strides = [1, 1, 1]} : vector<12x8x1xf32> to vector<8x8x1xf32>
    %77 = vector.broadcast %76 : vector<8x8x1xf32> to vector<8x8x512xf32>
    %78 = vector.broadcast %10 : vector<1x8x512xf32> to vector<8x8x512xf32>
    %79 = arith.subf %77, %78 : vector<8x8x512xf32>
    %80 = vector.broadcast %68 : vector<8x8x1xf32> to vector<8x8x512xf32>
    %81 = arith.mulf %79, %80 : vector<8x8x512xf32>
    %82 = vector.extract_strided_slice %63 {offsets = [1, 0, 0], sizes = [8, 8, 512], strides = [1, 1, 1]} : vector<9x8x512xf32> to vector<8x8x512xf32>
    %83 = arith.mulf %81, %82 : vector<8x8x512xf32>
    %84 = arith.addf %75, %83 : vector<8x8x512xf32>
    %85 = vector.shape_cast %84 : vector<8x8x512xf32> to vector<64x512xf32>
    %c0_28 = arith.constant 0 : index
    %c0_29 = arith.constant 0 : index
    %86 = vector.load %arg5[%c0_28, %c0_29] : memref<16x8xf32, #tpu.memory_space<vmem>>, vector<16x8xf32>
    %cst_30 = arith.constant dense<0.000000e+00> : vector<16x512xf32>
    %87 = tpu.matmul %86, %9, %cst_30 {dimension_numbers = #tpu.dot_dimension_numbers<[1], [0], [0], [1], [0, 0, 1, 1], [], []>} : vector<16x8xf32>, vector<8x512xf32>, vector<16x512xf32> -> vector<16x512xf32>
    %c0_31 = arith.constant 0 : index
    %c0_32 = arith.constant 0 : index
    %88 = vector.load %arg6[%c0_31, %c0_32] : memref<16x64xf32, #tpu.memory_space<vmem>>, vector<16x64xf32>
    %cst_33 = arith.constant dense<0.000000e+00> : vector<16x512xf32>
    %89 = tpu.matmul %88, %85, %cst_33 {dimension_numbers = #tpu.dot_dimension_numbers<[1], [0], [0], [1], [0, 0, 1, 1], [], []>} : vector<16x64xf32>, vector<64x512xf32>, vector<16x512xf32> -> vector<16x512xf32>
    %90 = arith.addf %87, %89 : vector<16x512xf32>
    %c0_34 = arith.constant 0 : index
    %c0_35 = arith.constant 0 : index
    %91 = vector.load %arg7[%c0_34, %c0_35] : memref<16x1xf32, #tpu.memory_space<vmem>>, vector<16x1xf32>
    %c0_36 = arith.constant 0 : index
    %c0_37 = arith.constant 0 : index
    %92 = vector.load %arg8[%c0_36, %c0_37] : memref<16x1xf32, #tpu.memory_space<vmem>>, vector<16x1xf32>
    %c0_38 = arith.constant 0 : index
    %93 = memref.load %arg9[%c0_38] : memref<1xf32, #tpu.memory_space<smem>>
    %cst_39 = arith.constant dense<0.000000e+00> : vector<512xf32>
    %94 = vector.multi_reduction <add>, %90, %cst_39 [0] : vector<16x512xf32> to vector<512xf32>
    %95 = vector.shape_cast %94 : vector<512xf32> to vector<1x512xf32>
    %cst_40 = arith.constant 1.600000e+01 : f32
    %96 = vector.broadcast %cst_40 : f32 to vector<1x512xf32>
    %97 = arith.divf %95, %96 : vector<1x512xf32>
    %98 = vector.broadcast %97 : vector<1x512xf32> to vector<16x512xf32>
    %99 = arith.subf %90, %98 : vector<16x512xf32>
    %100 = arith.mulf %99, %99 : vector<16x512xf32>
    %cst_41 = arith.constant dense<0.000000e+00> : vector<512xf32>
    %101 = vector.multi_reduction <add>, %100, %cst_41 [0] : vector<16x512xf32> to vector<512xf32>
    %102 = vector.shape_cast %101 : vector<512xf32> to vector<1x512xf32>
    %cst_42 = arith.constant 1.600000e+01 : f32
    %103 = vector.broadcast %cst_42 : f32 to vector<1x512xf32>
    %104 = arith.divf %102, %103 : vector<1x512xf32>
    %105 = vector.broadcast %97 : vector<1x512xf32> to vector<16x512xf32>
    %106 = arith.subf %90, %105 : vector<16x512xf32>
    %cst_43 = arith.constant 9.99999974E-6 : f32
    %107 = vector.broadcast %cst_43 : f32 to vector<1x512xf32>
    %108 = arith.addf %104, %107 : vector<1x512xf32>
    %109 = math.rsqrt %108 : vector<1x512xf32>
    %110 = vector.broadcast %109 : vector<1x512xf32> to vector<16x512xf32>
    %111 = arith.mulf %106, %110 : vector<16x512xf32>
    %112 = vector.broadcast %91 : vector<16x1xf32> to vector<16x512xf32>
    %113 = arith.mulf %111, %112 : vector<16x512xf32>
    %114 = vector.broadcast %92 : vector<16x1xf32> to vector<16x512xf32>
    %115 = arith.addf %113, %114 : vector<16x512xf32>
    %cst_44 = arith.constant 0.000000e+00 : f32
    %116 = vector.broadcast %cst_44 : f32 to vector<16x512xf32>
    %117 = arith.cmpf oge, %115, %116 : vector<16x512xf32>
    %118 = vector.broadcast %93 : f32 to vector<16x512xf32>
    %119 = arith.mulf %118, %115 : vector<16x512xf32>
    %120 = arith.select %117, %115, %119 : vector<16x512xi1>, vector<16x512xf32>
    %c0_45 = arith.constant 0 : index
    %c0_46 = arith.constant 0 : index
    %121 = vector.load %arg10[%c0_45, %c0_46] : memref<16x512xf32, #tpu.memory_space<vmem>>, vector<16x512xf32>
    tpu.vector_store %arg10[%c0_45, %c0_46], %120 {strides = array<i32>} : memref<16x512xf32, #tpu.memory_space<vmem>>, vector<16x512xf32>,
    return
  }
  func.func @transform_0(%arg0: i32) -> (i32, i32) {
    %c0_i32 = arith.constant 0 : i32
    %c0_i32_0 = arith.constant 0 : i32
    return %c0_i32, %arg0 : i32, i32
  }
  func.func @transform_1(%arg0: i32) -> (i32, i32, i32) {
    %c0_i32 = arith.constant 0 : i32
    %c0_i32_0 = arith.constant 0 : i32
    %c0_i32_1 = arith.constant 0 : i32
    %c0_i32_2 = arith.constant 0 : i32
    return %c0_i32, %c0_i32_0, %c0_i32_1 : i32, i32, i32
  }
  func.func @transform_2(%arg0: i32) -> (i32, i32, i32, i32) {
    %c0_i32 = arith.constant 0 : i32
    %c0_i32_0 = arith.constant 0 : i32
    %c0_i32_1 = arith.constant 0 : i32
    %c0_i32_2 = arith.constant 0 : i32
    %c0_i32_3 = arith.constant 0 : i32
    return %c0_i32, %c0_i32_0, %c0_i32_1, %c0_i32_2 : i32, i32, i32, i32
  }
  func.func @transform_3(%arg0: i32) -> (i32, i32, i32, i32) {
    %c0_i32 = arith.constant 0 : i32
    %c0_i32_0 = arith.constant 0 : i32
    %c0_i32_1 = arith.constant 0 : i32
    %c0_i32_2 = arith.constant 0 : i32
    %c0_i32_3 = arith.constant 0 : i32
    return %c0_i32, %c0_i32_0, %c0_i32_1, %c0_i32_2 : i32, i32, i32, i32
  }
  func.func @transform_4(%arg0: i32) -> (i32, i32) {
    %c0_i32 = arith.constant 0 : i32
    %c0_i32_0 = arith.constant 0 : i32
    %c0_i32_1 = arith.constant 0 : i32
    return %c0_i32, %c0_i32_0 : i32, i32
  }
  func.func @transform_5(%arg0: i32) -> (i32, i32) {
    %c0_i32 = arith.constant 0 : i32
    %c0_i32_0 = arith.constant 0 : i32
    %c0_i32_1 = arith.constant 0 : i32
    return %c0_i32, %c0_i32_0 : i32, i32
  }
  func.func @transform_6(%arg0: i32) -> (i32, i32) {
    %c0_i32 = arith.constant 0 : i32
    %c0_i32_0 = arith.constant 0 : i32
    %c0_i32_1 = arith.constant 0 : i32
    return %c0_i32, %c0_i32_0 : i32, i32
  }
  func.func @transform_7(%arg0: i32) -> (i32, i32) {
    %c0_i32 = arith.constant 0 : i32
    %c0_i32_0 = arith.constant 0 : i32
    %c0_i32_1 = arith.constant 0 : i32
    return %c0_i32, %c0_i32_0 : i32, i32
  }
  func.func @transform_8(%arg0: i32) -> i32 {
    %c0_i32 = arith.constant 0 : i32
    %c0_i32_0 = arith.constant 0 : i32
    return %c0_i32 : i32
  }
  func.func @transform_9(%arg0: i32) -> (i32, i32) {
    %c0_i32 = arith.constant 0 : i32
    %c0_i32_0 = arith.constant 0 : i32
    return %c0_i32, %arg0 : i32, i32
  }
}

</mosaic_0001>

<bundles_post_ra>
// kernel: kan_layer.1
= control target key start
LH: loop header
LB: loop body
LE: loop exit
PB: predicated region body
PF: predicated region fallthrough
CT: control target
= control target key end

     0   :  { %v1946_v2 = vmov 0   ;;  %v3989_v5 = vmov 0.0   ;;  %s3979_s0 = inlined_call_operand.vmem [shape: f32[8,512], index: 0, kind: input, shape index: {}]   ;;  %s3980_s1 = inlined_call_operand.vmem [shape: f32[12,8,1], index: 1, kind: input, shape index: {}]   ;;  %s3981_s2 = inlined_call_operand.vmem [shape: f32[3,10,8,1], index: 2, kind: input, shape index: {}]   ;;  %s3982_s3 = inlined_call_operand.vmem [shape: f32[3,10,8,1], index: 3, kind: input, shape index: {}]   ;;  %s3983_s4 = inlined_call_operand.vmem [shape: f32[16,8], index: 4, kind: input, shape index: {}]   ;;  %s3984_s5 = inlined_call_operand.vmem [shape: f32[16,64], index: 5, kind: input, shape index: {}]   ;;  %s3985_s6 = inlined_call_operand.vmem [shape: f32[16,1], index: 6, kind: input, shape index: {}]   ;;  %s3986_s7 = inlined_call_operand.vmem [shape: f32[16,1], index: 7, kind: input, shape index: {}]   ;;  %s3987_s8 = inlined_call_operand.<no memory space> [shape: f32[1], index: 8, kind: input, shape index: {}]   ;;  %s3988_s9 = inlined_call_operand.hbm [shape: f32[16,512], index: 9, kind: output, shape index: {}]  }
   0x1   :  { %v47_v0 = vld [vmem:[%s3980_s1 + $0x48] sm:$0xff]  ;;  %v45_v1 = vld [vmem:[%s3980_s1 + $0x38] sm:$0xff]  ;;  %1903 = vset.pattern.permute.xlu1 %v1946_v2  ;;  %1902 = vset.pattern.permute.xlu0 %v1946_v2  ;;  %v48_v3 = vld [vmem:[%s3980_s1 + $0x50] sm:$0xff] }
   0x2   :  { %117 = vperm.xlu1 %1903, %v47_v0   ;;  %107 = vperm.xlu0 %1902, %v45_v1   ;;  %v46_v4 = vld [vmem:[%s3980_s1 + $0x40] sm:$0xff]  ;;  %v49_v6 = vld [vmem:[%s3980_s1 + $0x58] sm:$0xff]  ;;  %v44_v7 = vld [vmem:[%s3980_s1 + $0x30] sm:$0xff] }
   0x3   :  { %1373 = vmatprep.mubr.f32.mxu0 %v3989_v5  ;;  %1450 = vmatprep.mubr.f32.mxu1 %v3989_v5  ;;  %v357_v8 = vld [vmem:[%s3981_s2 + $0x38] sm:$0xff]  ;;  %v358_v9 = vld [vmem:[%s3981_s2 + $0x40] sm:$0xff]  ;;  %v359_v10 = vld [vmem:[%s3981_s2 + $0x48] sm:$0xff] }
   0x4   :  { %v367_v11 = vld [vmem:[%s3982_s3 + $0x38] sm:$0xff]  ;;  %v368_v12 = vld [vmem:[%s3982_s3 + $0x40] sm:$0xff]  ;;  %v369_v13 = vld [vmem:[%s3982_s3 + $0x48] sm:$0xff] }
   0x5   :  { %v356_v14 = vld [vmem:[%s3981_s2 + $0x30] sm:$0xff]  ;;  %v43_v15 = vld [vmem:[%s3980_s1 + $0x28] sm:$0xff] }
   0x6   :  { %122 = vperm.xlu1 %1903, %v48_v3   ;;  %112 = vperm.xlu0 %1902, %v46_v4  }
   0xa   :  { %171 = vperm.xlu0 %1902, %v49_v6   ;;  %102 = vperm.xlu1 %1903, %v44_v7  }
   0xe   :  { %447 = vperm.xlu0 %1902, %v357_v8   ;;  %452 = vperm.xlu1 %1903, %v358_v9  }
  0x12   :  { %457 = vperm.xlu0 %1902, %v359_v10   ;;  %617 = vperm.xlu1 %1903, %v367_v11  }
  0x16   :  { %622 = vperm.xlu0 %1902, %v368_v12   ;;  %627 = vperm.xlu1 %1903, %v369_v13  }
  0x17   :  { %15 = vsyncpa [#allocation4], 0  ;;  %v366_v16 = vld [vmem:[%s3982_s3 + $0x30] sm:$0xff]  ;;  %v42_v17 = vld [vmem:[%s3980_s1 + $0x20] sm:$0xff] }
  0x18   :  { %v355_v18 = vld [vmem:[%s3981_s2 + $0x28] sm:$0xff]  ;;  %v1863_v21 = vld [vmem:[%s3981_s2 + $0x90] sm:$0xff]  ;;  %v354_v24 = vld [vmem:[%s3981_s2 + $0x20] sm:$0xff] }
  0x19   :  { %v365_v19 = vld [vmem:[%s3982_s3 + $0x28] sm:$0xff]  ;;  %v1872_v23 = vld [vmem:[%s3982_s3 + $0x90] sm:$0xff]  ;;  %v41_v25 = vld [vmem:[%s3980_s1 + $0x18] sm:$0xff] }
  0x1a   :  { %442 = vperm.xlu1 %1903, %v356_v14   ;;  %97 = vperm.xlu0 %1902, %v43_v15   ;;  %v1862_v20 = vld [vmem:[%s3981_s2 + $0x88] sm:$0xff]  ;;  %v1861_v26 = vld [vmem:[%s3981_s2 + $0x80] sm:$0xff]  ;;  %v40_v29 = vld [vmem:[%s3980_s1 + $0x10] sm:$0xff] }
  0x1b   :  { %v1871_v22 = vld [vmem:[%s3982_s3 + $0x88] sm:$0xff]  ;;  %v364_v27 = vld [vmem:[%s3982_s3 + $0x20] sm:$0xff]  ;;  %v353_v30 = vld [vmem:[%s3981_s2 + $0x18] sm:$0xff] }
  0x1c   :  { %v1870_v28 = vld [vmem:[%s3982_s3 + $0x80] sm:$0xff]  ;;  %v363_v31 = vld [vmem:[%s3982_s3 + $0x18] sm:$0xff]  ;;  %v352_v36 = vld [vmem:[%s3981_s2 + $0x10] sm:$0xff] }
  0x1d   :  { %v1860_v32 = vld [vmem:[%s3981_s2 + $0x78] sm:$0xff]  ;;  %v39_v37 = vld [vmem:[%s3980_s1 + $0x8] sm:$0xff]  ;;  %v1859_v38 = vld [vmem:[%s3981_s2 + $0x70] sm:$0xff] }
  0x1e   :  { %612 = vperm.xlu0 %1902, %v366_v16   ;;  %92 = vperm.xlu1 %1903, %v42_v17   ;;  %v1869_v33 = vld [vmem:[%s3982_s3 + $0x78] sm:$0xff]  ;;  %v362_v39 = vld [vmem:[%s3982_s3 + $0x10] sm:$0xff]  ;;  %v38_v43 = vld [vmem:[%s3980_s1] sm:$0xff] }
  0x1f   :  { %v1880_v34 = vld [vmem:[%s3981_s2 + $0xd8] sm:$0xff]  ;;  %v1879_v40 = vld [vmem:[%s3981_s2 + $0xd0] sm:$0xff]  ;;  %v351_v44 = vld [vmem:[%s3981_s2 + $0x8] sm:$0xff] }
  0x20   :  { %v1888_v35 = vld [vmem:[%s3982_s3 + $0xd8] sm:$0xff]  ;;  %v1868_v41 = vld [vmem:[%s3982_s3 + $0x70] sm:$0xff]  ;;  %v361_v45 = vld [vmem:[%s3982_s3 + $0x8] sm:$0xff] }
  0x21   :  { %v1887_v42 = vld [vmem:[%s3982_s3 + $0xd0] sm:$0xff]  ;;  %v1858_v46 = vld [vmem:[%s3981_s2 + $0x68] sm:$0xff]  ;;  %v350_v50 = vld [vmem:[%s3981_s2] sm:$0xff] }
  0x22   :  { %437 = vperm.xlu0 %1902, %v355_v18   ;;  %607 = vperm.xlu1 %1903, %v365_v19   ;;  %v1867_v47 = vld [vmem:[%s3982_s3 + $0x68] sm:$0xff]  ;;  %v360_v51 = vld [vmem:[%s3982_s3] sm:$0xff]  ;;  %v1856_v56 = vld [vmem:[%s3981_s2 + $0x58] sm:$0xff] }
  0x23   :  { %v1878_v48 = vld [vmem:[%s3981_s2 + $0xc8] sm:$0xff]  ;;  %v1857_v52 = vld [vmem:[%s3981_s2 + $0x60] sm:$0xff]  ;;  %v1865_v57 = vld [vmem:[%s3982_s3 + $0x58] sm:$0xff] }
  0x24   :  { %v1886_v49 = vld [vmem:[%s3982_s3 + $0xc8] sm:$0xff]  ;;  %v1866_v53 = vld [vmem:[%s3982_s3 + $0x60] sm:$0xff]  ;;  %v1876_v58 = vld [vmem:[%s3981_s2 + $0xb8] sm:$0xff] }
  0x25   :  { %v1877_v54 = vld [vmem:[%s3981_s2 + $0xc0] sm:$0xff]  ;;  %v1884_v59 = vld [vmem:[%s3982_s3 + $0xb8] sm:$0xff]  ;;  %v1855_v60 = vld [vmem:[%s3981_s2 + $0x50] sm:$0xff] }
  0x26   :  { %807 = vperm.xlu0 %1902, %v1862_v20   ;;  %812 = vperm.xlu1 %1903, %v1863_v21   ;;  %v1885_v55 = vld [vmem:[%s3982_s3 + $0xc0] sm:$0xff]  ;;  %v1864_v61 = vld [vmem:[%s3982_s3 + $0x50] sm:$0xff]  ;;  %v1874_v0 = vld [vmem:[%s3981_s2 + $0xa8] sm:$0xff] }
  0x27   :  { %v1875_v62 = vld [vmem:[%s3981_s2 + $0xb0] sm:$0xff]  ;;  %v1882_v1 = vld [vmem:[%s3982_s3 + $0xa8] sm:$0xff]  ;;  %v2198_v2 = vld [vmem:[%s3979_s0] sm:$0xff] }
  0x28   :  { %v1883_v63 = vld [vmem:[%s3982_s3 + $0xb0] sm:$0xff]  ;;  %v2203_v3 = vld [vmem:[%s3979_s0 + $0x8] sm:$0xff]  ;;  %v2213_v6 = vld [vmem:[%s3979_s0 + $0x18] sm:$0xff] }
  0x29   :  { %v2208_v4 = vld [vmem:[%s3979_s0 + $0x10] sm:$0xff]  ;;  %v1873_v9 = vld [vmem:[%s3981_s2 + $0xa0] sm:$0xff]  ;;  %v1625_v18 = vld [vmem:[%s3985_s6 + $0x8] sm:$0xff] }
  0x2a   :  { %924 = vperm.xlu0 %1902, %v1871_v22   ;;  %929 = vperm.xlu1 %1903, %v1872_v23   ;;  %v1881_v10 = vld [vmem:[%s3982_s3 + $0xa0] sm:$0xff] }
  0x2b   :  { %v1624_v17 = vld [vmem:[%s3985_s6] sm:$0xff] }
  0x2e   :  { %432 = vperm.xlu1 %1903, %v354_v24   ;;  %87 = vperm.xlu0 %1902, %v41_v25  }
  0x32   :  { %802 = vperm.xlu1 %1903, %v1861_v26   ;;  %602 = vperm.xlu0 %1902, %v364_v27  }
  0x36   :  { %919 = vperm.xlu0 %1902, %v1870_v28   ;;  %82 = vperm.xlu1 %1903, %v40_v29   ;;  %v1626_v29 = vld [vmem:[%s3986_s7] sm:$0xff] }
  0x3a   :  { %427 = vperm.xlu0 %1902, %v353_v30   ;;  %597 = vperm.xlu1 %1903, %v363_v31  }
  0x3e   :  { %797 = vperm.xlu0 %1902, %v1860_v32   ;;  %914 = vperm.xlu1 %1903, %v1869_v33   ;;  %v1627_v33 = vld [vmem:[%s3986_s7 + $0x8] sm:$0xff] }
  0x42   :  { %1095 = vperm.xlu0 %1902, %v1880_v34   ;;  %1199 = vperm.xlu1 %1903, %v1888_v35  }
  0x46   :  { %422 = vperm.xlu1 %1903, %v352_v36   ;;  %77 = vperm.xlu0 %1902, %v39_v37  }
  0x4a   :  { %792 = vperm.xlu1 %1903, %v1859_v38   ;;  %592 = vperm.xlu0 %1902, %v362_v39  }
  0x4e   :  { %1090 = vperm.xlu1 %1903, %v1879_v40   ;;  %909 = vperm.xlu0 %1902, %v1868_v41  }
  0x52   :  { %1194 = vperm.xlu0 %1902, %v1887_v42   ;;  %72 = vperm.xlu1 %1903, %v38_v43  }
  0x56   :  { %417 = vperm.xlu0 %1902, %v351_v44   ;;  %587 = vperm.xlu1 %1903, %v361_v45  }
  0x5a   :  { %787 = vperm.xlu0 %1902, %v1858_v46   ;;  %904 = vperm.xlu1 %1903, %v1867_v47  }
  0x5e   :  { %1085 = vperm.xlu0 %1902, %v1878_v48   ;;  %1189 = vperm.xlu1 %1903, %v1886_v49  }
  0x62   :  { %412 = vperm.xlu0 %1902, %v350_v50   ;;  %582 = vperm.xlu1 %1903, %v360_v51  }
  0x66   :  { %782 = vperm.xlu0 %1902, %v1857_v52   ;;  %899 = vperm.xlu1 %1903, %v1866_v53  }
  0x6a   :  { %1080 = vperm.xlu0 %1902, %v1877_v54   ;;  %1184 = vperm.xlu1 %1903, %v1885_v55  }
  0x6e   :  { %777 = vperm.xlu0 %1902, %v1856_v56   ;;  %894 = vperm.xlu1 %1903, %v1865_v57  }
  0x72   :  { %1075 = vperm.xlu0 %1902, %v1876_v58   ;;  %1179 = vperm.xlu1 %1903, %v1884_v59  }
  0x76   :  { %772 = vperm.xlu0 %1902, %v1855_v60   ;;  %889 = vperm.xlu1 %1903, %v1864_v61  }
  0x7a   :  { %1070 = vperm.xlu0 %1902, %v1875_v62   ;;  %1174 = vperm.xlu1 %1903, %v1883_v63  }
  0x7d   :  { %v2215_v7 = vpop.permute.xlu1 %117  ;;  %v2217_v8 = vpop.permute.xlu0 %107 }
  0x7e   :  { %1065 = vperm.xlu0 %1902, %v1874_v0   ;;  %1169 = vperm.xlu1 %1903, %v1882_v1   ;;  %vm153_vm0 = vcmp.ge.f32.partialorder %v2198_v2, %v2217_v8  ;;  %vm154_vm1 = vcmp.ge.f32.partialorder %v2203_v3, %v2217_v8  ;;  %vm155_vm2 = vcmp.ge.f32.partialorder %v2208_v4, %v2217_v8 }
  0x7f   :  { %vm156_vm3 = vcmp.ge.f32.partialorder %v2213_v6, %v2217_v8  ;;  %v2235_v11 = vsub.f32 %v2198_v2, %v2217_v8  ;;  %v2239_v12 = vsub.f32 %v2203_v3, %v2217_v8  ;;  %v2243_v13 = vsub.f32 %v2208_v4, %v2217_v8 }
  0x80   :  { %v2247_v14 = vsub.f32 %v2213_v6, %v2217_v8  ;;  %vm206_vm4 = vcmp.lt.f32.partialorder %v2198_v2, %v2215_v7  ;;  %vm207_vm5 = vcmp.lt.f32.partialorder %v2203_v3, %v2215_v7  ;;  %vm162_vm7 = vcmp.ge.f32.partialorder %v2203_v3, %v2215_v7 }
  0x81   :  { %4111 = vst [vmem:[#allocation6_spill] sm:$0xff] %v2235_v11  ;;  %4112 = vst [vmem:[#allocation7_spill] sm:$0xff] %v2243_v13  ;;  %v2249_v15 = vpop.permute.xlu1 %122  ;;  %v2251_v16 = vpop.permute.xlu0 %112  ;;  %v406_v30 = vsub.f32 %v2198_v2, %v2215_v7  ;;  %v407_v31 = vsub.f32 %v2203_v3, %v2215_v7  ;;  %v408_v34 = vsub.f32 %v2208_v4, %v2215_v7 }
  0x82   :  { %1060 = vperm.xlu0 %1902, %v1873_v9   ;;  %1164 = vperm.xlu1 %1903, %v1881_v10   ;;  %vm202_vm8 = vcmp.lt.f32.partialorder %v2198_v2, %v2251_v16  ;;  %vm203_vm9 = vcmp.lt.f32.partialorder %v2203_v3, %v2251_v16  ;;  %vm204_vm10 = vcmp.lt.f32.partialorder %v2208_v4, %v2251_v16 }
  0x83   :  { %vm205_vm12 = vcmp.lt.f32.partialorder %v2213_v6, %v2251_v16  ;;  %vm246_vm13 = vmand %vm153_vm0, %vm202_vm8  ;;  %vm157_vm14 = vcmp.ge.f32.partialorder %v2198_v2, %v2251_v16  ;;  %vm158_vm15 = vcmp.ge.f32.partialorder %v2203_v3, %v2251_v16  ;;  %vm159_vm11 = vcmp.ge.f32.partialorder %v2208_v4, %v2251_v16 }
  0x84   :  { %vm247_vm6 = vmand %vm154_vm1, %vm203_vm9  ;;  %v2292_v19 = vsel %vm246_vm13, 1.0, %v3989_v5  ;;  %vm160_vm0 = vcmp.ge.f32.partialorder %v2213_v6, %v2251_v16  ;;  %v2298_v20 = vsub.f32 %v2198_v2, %v2251_v16  ;;  %v2302_v21 = vsub.f32 %v2203_v3, %v2251_v16 }
  0x85   :  { %vm163_vm8 = vcmp.ge.f32.partialorder %v2208_v4, %v2215_v7  ;;  %v2306_v22 = vpop.permute.xlu0 %171  ;;  %v2308_v23 = vpop.permute.xlu1 %102  ;;  %vm248_vm1 = vmand %vm155_vm2, %vm204_vm10  ;;  %v2317_v24 = vsel %vm247_vm6, 1.0, %v3989_v5  ;;  %v2321_v25 = vsub.f32 %v2208_v4, %v2251_v16  ;;  %v2325_v26 = vsub.f32 %v2213_v6, %v2251_v16 }
  0x86   :  { %vm164_vm9 = vcmp.ge.f32.partialorder %v2213_v6, %v2215_v7  ;;  %1728 = vperm.xlu0 %1902, %v1624_v17   ;;  %1733 = vperm.xlu1 %1903, %v1625_v18   ;;  %vm249_vm2 = vmand %vm156_vm3, %vm205_vm12  ;;  %v2336_v27 = vsel %vm248_vm1, 1.0, %v3989_v5  ;;  %vm210_vm6 = vcmp.lt.f32.partialorder %v2198_v2, %v2249_v15  ;;  %vm211_vm10 = vcmp.lt.f32.partialorder %v2203_v3, %v2249_v15 }
  0x87   :  { %vm212_vm13 = vcmp.lt.f32.partialorder %v2208_v4, %v2249_v15  ;;  %v2345_v28 = vsel %vm249_vm2, 1.0, %v3989_v5  ;;  %vm250_vm3 = vmand %vm157_vm14, %vm206_vm4  ;;  %vm213_vm12 = vcmp.lt.f32.partialorder %v2213_v6, %v2249_v15  ;;  %v409_v35 = vsub.f32 %v2213_v6, %v2215_v7 }
  0x88   :  { %vm251_vm4 = vmand %vm158_vm15, %vm207_vm5  ;;  %v1843_v32 = vsel %vm250_vm3, 1.0, %v3989_v5  ;;  %v2378_v36 = vsub.f32 %v2215_v7, %v2198_v2  ;;  %vm4114_vm5 = vcmp.lt.f32.partialorder %v2208_v4, %v2215_v7  ;;  %v2389_v40 = vsub.f32 %v2215_v7, %v2203_v3 }
  0x89   :  { %v448_v37 = vpop.permute.xlu0 %447  ;;  %v453_v38 = vpop.permute.xlu1 %452  ;;  %vm252_vm14 = vmand %vm159_vm11, %vm4114_vm5  ;;  %v1844_v39 = vsel %vm251_vm4, 1.0, %v3989_v5  ;;  %v2393_v41 = vsub.f32 %v2215_v7, %v2208_v4  ;;  %v2397_v42 = vsub.f32 %v2215_v7, %v2213_v6  ;;  %vm4118_vm11 = vcmp.lt.f32.partialorder %v2213_v6, %v2215_v7 }
  0x8a   :  { %4113 = vst [vmem:[#allocation8_spill] sm:$0xff] %v2378_v36  ;;  %4115 = vst [vmem:[#allocation9_spill] sm:$0xff] %v2389_v40  ;;  %v488_v43 = vmul.f32 %v448_v37, %v2235_v11  ;;  %v489_v44 = vmul.f32 %v448_v37, %v2239_v12  ;;  %v490_v45 = vmul.f32 %v448_v37, %v2243_v13  ;;  %1746 = vperm.xlu0 %1902, %v1626_v29  }
  0x8b   :  { %4116 = vst [vmem:[#allocation10_spill] sm:$0xff] %v2393_v41  ;;  %4117 = vst [vmem:[#allocation11_spill] sm:$0xff] %v2397_v42  ;;  %v491_v46 = vmul.f32 %v448_v37, %v2247_v14  ;;  %v1845_v47 = vsel %vm252_vm14, 1.0, %v3989_v5  ;;  %v492_v49 = vmul.f32 %v453_v38, %v2298_v20  ;;  %v493_v50 = vmul.f32 %v453_v38, %v2302_v21 }
  0x8c   :  { %vm253_vm15 = vmand %vm160_vm0, %vm4118_vm11  ;;  %1751 = vperm.xlu1 %1903, %v1627_v33   ;;  %vm4119_vm1 = vcmp.ge.f32.partialorder %v2198_v2, %v2215_v7  ;;  %v2420_v51 = vmul.f32 %v2292_v19, %v488_v43  ;;  %v2423_v52 = vmul.f32 %v2317_v24, %v489_v44  ;;  %v2426_v53 = vmul.f32 %v2336_v27, %v490_v45 }
  0x8d   :  { %v1846_v48 = vsel %vm253_vm15, 1.0, %v3989_v5  ;;  %vm254_vm2 = vmand %vm4119_vm1, %vm210_vm6  ;;  %v2429_v54 = vmul.f32 %v2345_v28, %v491_v46  ;;  %v494_v55 = vmul.f32 %v453_v38, %v2321_v25  ;;  %v495_v56 = vmul.f32 %v453_v38, %v2325_v26  ;;  %v458_v59 = vpop.permute.xlu0 %457  ;;  %v618_v60 = vpop.permute.xlu1 %617 }
  0x8e   :  { %4120 = vst [vmem:[#allocation12_spill] sm:$0xff] %v2423_v52  ;;  %4121 = vst [vmem:[#allocation13_spill] sm:$0xff] %v2426_v53  ;;  %v2439_v57 = vmul.f32 %v1843_v32, %v492_v49  ;;  %v2441_v58 = vmul.f32 %v1844_v39, %v493_v50  ;;  %v1847_v61 = vsel %vm254_vm2, 1.0, %v3989_v5  ;;  %v496_v0 = vmul.f32 %v458_v59, %v406_v30 }
  0x8f   :  { %4122 = vst [vmem:[#allocation14_spill] sm:$0xff] %v2429_v54  ;;  %vm255_vm0 = vmand %vm162_vm7, %vm211_vm10  ;;  %v2458_v1 = vmul.f32 %v1845_v47, %v494_v55  ;;  %v2460_v9 = vmul.f32 %v1846_v48, %v495_v56  ;;  %v497_v17 = vmul.f32 %v458_v59, %v407_v31  ;;  %v498_v18 = vmul.f32 %v458_v59, %v408_v34 }
  0x90   :  { %4123 = vst [vmem:[#allocation15_spill] sm:$0xff] %v2439_v57  ;;  %4124 = vst [vmem:[#allocation16_spill] sm:$0xff] %v2441_v58  ;;  %v1848_v62 = vsel %vm255_vm0, 1.0, %v3989_v5  ;;  %v499_v29 = vmul.f32 %v458_v59, %v409_v35  ;;  %v2463_v33 = vmul.f32 %v1847_v61, %v496_v0  ;;  %v658_v7 = vmul.f32 %v618_v60, %v2378_v36 }
  0x91   :  { %vm256_vm6 = vmand %vm163_vm8, %vm212_vm13  ;;  %4125 = vst [vmem:[#allocation17_spill] sm:$0xff] %v2458_v1  ;;  %v2466_v37 = vmul.f32 %v1848_v62, %v497_v17  ;;  %v659_v38 = vmul.f32 %v618_v60, %v2389_v40  ;;  %v660_v43 = vmul.f32 %v618_v60, %v2393_v41  ;;  %v661_v30 = vmul.f32 %v618_v60, %v2397_v42  ;;  %v623_v44 = vpop.permute.xlu0 %622  ;;  %v628_v45 = vpop.permute.xlu1 %627 }
  0x92   :  { %vm257_vm7 = vmand %vm164_vm9, %vm213_vm12  ;;  %v1849_v63 = vsel %vm256_vm6, 1.0, %v3989_v5  ;;  %4126 = vst [vmem:[#allocation18_spill] sm:$0xff] %v2460_v9  ;;  %v2475_v31 = vmul.f32 %v1843_v32, %v658_v7  ;;  %v2479_v34 = vsub.f32 %v2249_v15, %v2198_v2  ;;  %v2489_v56 = vsub.f32 %v2249_v15, %v2203_v3 }
  0x93   :  { %v1850_v10 = vsel %vm257_vm7, 1.0, %v3989_v5  ;;  %4127 = vst [vmem:[#allocation19_spill] sm:$0xff] %v2463_v33  ;;  %4128 = vst [vmem:[#allocation20_spill] sm:$0xff] %v2466_v37  ;;  %v2471_v46 = vmul.f32 %v1849_v63, %v498_v18  ;;  %v2481_v35 = vmul.f32 %v1844_v39, %v659_v38  ;;  %v2483_v50 = vmul.f32 %v1845_v47, %v660_v43 }
  0x94   :  { %v2473_v49 = vmul.f32 %v1850_v10, %v499_v29  ;;  %4131 = vst [vmem:[#allocation23_spill] sm:$0xff] %v2475_v31  ;;  %4132 = vst [vmem:[#allocation24_spill] sm:$0xff] %v2479_v34  ;;  %v2485_v55 = vmul.f32 %v1846_v48, %v661_v30  ;;  %v2493_v59 = vsub.f32 %v2249_v15, %v2208_v4 }
  0x95   :  { %4129 = vst [vmem:[#allocation21_spill] sm:$0xff] %v2471_v46  ;;  %4133 = vst [vmem:[#allocation25_spill] sm:$0xff] %v2481_v35  ;;  %v2497_v32 = vsub.f32 %v2249_v15, %v2213_v6  ;;  %v662_v60 = vmul.f32 %v623_v44, %v2479_v34  ;;  %vm165_vm8 = vcmp.ge.f32.partialorder %v2198_v2, %v2249_v15  ;;  %v443_v47 = vpop.permute.xlu1 %442  ;;  %v2509_v48 = vpop.permute.xlu0 %97 }
  0x96   :  { %4130 = vst [vmem:[#allocation22_spill] sm:$0xff] %v2473_v49  ;;  %4134 = vst [vmem:[#allocation26_spill] sm:$0xff] %v2483_v50  ;;  %v663_v39 = vmul.f32 %v623_v44, %v2489_v56  ;;  %vm166_vm9 = vcmp.ge.f32.partialorder %v2203_v3, %v2249_v15  ;;  %vm167_vm10 = vcmp.ge.f32.partialorder %v2208_v4, %v2249_v15 }
  0x97   :  { %4135 = vst [vmem:[#allocation27_spill] sm:$0xff] %v2485_v55  ;;  %4136 = vst [vmem:[#allocation28_spill] sm:$0xff] %v2489_v56  ;;  %vm168_vm13 = vcmp.ge.f32.partialorder %v2213_v6, %v2249_v15  ;;  %v664_v0 = vmul.f32 %v623_v44, %v2493_v59  ;;  %v665_v17 = vmul.f32 %v623_v44, %v2497_v32 }
  0x98   :  { %4137 = vst [vmem:[#allocation29_spill] sm:$0xff] %v2493_v59  ;;  %4138 = vst [vmem:[#allocation30_spill] sm:$0xff] %v2497_v32  ;;  %v2513_v18 = vmul.f32 %v1847_v61, %v662_v60  ;;  %vm214_vm3 = vcmp.lt.f32.partialorder %v2198_v2, %v2306_v22  ;;  %v2517_v29 = vmul.f32 %v1848_v62, %v663_v39 }
  0x99   :  { %vm215_vm12 = vcmp.lt.f32.partialorder %v2203_v3, %v2306_v22  ;;  %vm216_vm4 = vcmp.lt.f32.partialorder %v2208_v4, %v2306_v22  ;;  %vm217_vm5 = vcmp.lt.f32.partialorder %v2213_v6, %v2306_v22  ;;  %vm258_vm14 = vmand %vm165_vm8, %vm214_vm3  ;;  %v2528_v61 = vmul.f32 %v1849_v63, %v664_v0  ;;  %v613_v44 = vpop.permute.xlu0 %612  ;;  %v2556_v60 = vpop.permute.xlu1 %92 }
  0x9a   :  { %4139 = vst [vmem:[#allocation31_spill] sm:$0xff] %v2513_v18  ;;  %4140 = vst [vmem:[#allocation32_spill] sm:$0xff] %v2517_v29  ;;  %v2530_v7 = vmul.f32 %v1850_v10, %v665_v17  ;;  %v1851_v62 = vsel %vm258_vm14, 1.0, %v3989_v5  ;;  %v2538_v38 = vsub.f32 %v2306_v22, %v2198_v2  ;;  %v2546_v63 = vsub.f32 %v2306_v22, %v2203_v3 }
  0x9b   :  { %4141 = vst [vmem:[#allocation33_spill] sm:$0xff] %v2528_v61  ;;  %vm259_vm11 = vmand %vm166_vm9, %vm215_vm12  ;;  %v2550_v10 = vsub.f32 %v2306_v22, %v2208_v4  ;;  %v2554_v30 = vsub.f32 %v2306_v22, %v2213_v6  ;;  %vm149_vm2 = vcmp.ge.f32.partialorder %v2198_v2, %v2308_v23  ;;  %vm150_vm0 = vcmp.ge.f32.partialorder %v2203_v3, %v2308_v23 }
  0x9c   :  { %4142 = vst [vmem:[#allocation34_spill] sm:$0xff] %v2530_v7  ;;  %4143 = vst [vmem:[#allocation35_spill] sm:$0xff] %v2538_v38  ;;  %v1852_v43 = vsel %vm259_vm11, 1.0, %v3989_v5  ;;  %v666_v0 = vmul.f32 %v628_v45, %v2538_v38  ;;  %v667_v17 = vmul.f32 %v628_v45, %v2546_v63  ;;  %vm151_vm6 = vcmp.ge.f32.partialorder %v2208_v4, %v2308_v23 }
  0x9d   :  { %vm260_vm15 = vmand %vm167_vm10, %vm216_vm4  ;;  %4144 = vst [vmem:[#allocation36_spill] sm:$0xff] %v2550_v10  ;;  %v668_v46 = vmul.f32 %v628_v45, %v2550_v10  ;;  %v669_v61 = vmul.f32 %v628_v45, %v2554_v30  ;;  %vm152_vm7 = vcmp.ge.f32.partialorder %v2213_v6, %v2308_v23  ;;  %vm198_vm8 = vcmp.lt.f32.partialorder %v2198_v2, %v2217_v8  ;;  %v2587_v45 = vpop.permute.xlu0 %437 }
  0x9e   :  { %4145 = vst [vmem:[#allocation37_spill] sm:$0xff] %v2556_v60  ;;  %vm261_vm1 = vmand %vm168_vm13, %vm217_vm5  ;;  %v1853_v39 = vsel %vm260_vm15, 1.0, %v3989_v5  ;;  %v2571_v15 = vmul.f32 %v1851_v62, %v666_v0  ;;  %v2579_v1 = vmul.f32 %v1852_v43, %v667_v17  ;;  %vm199_vm9 = vcmp.lt.f32.partialorder %v2203_v3, %v2217_v8  ;;  %v2589_v62 = vpop.permute.xlu1 %607 }
  0x9f   :  { %v1854_v22 = vsel %vm261_vm1, 1.0, %v3989_v5  ;;  %v2581_v5 = vmul.f32 %v1853_v39, %v668_v46  ;;  %vm242_vm10 = vmand %vm149_vm2, %vm198_vm8  ;;  %vm200_vm13 = vcmp.lt.f32.partialorder %v2208_v4, %v2217_v8  ;;  %vm201_vm3 = vcmp.lt.f32.partialorder %v2213_v6, %v2217_v8 }
  0xa0   :  { %4146 = vst [vmem:[#allocation38_spill] sm:$0xff] %v2571_v15  ;;  %4147 = vst [vmem:[#allocation39_spill] sm:$0xff] %v2579_v1  ;;  %v2583_v33 = vmul.f32 %v1854_v22, %v669_v61  ;;  %v4150_v46 = vmov 0.0   ;;  %v2603_v43 = vsub.f32 %v2198_v2, %v2308_v23  ;;  %v2613_v0 = vsub.f32 %v2203_v3, %v2308_v23 }
  0xa1   :  { %4148 = vst [vmem:[#allocation40_spill] sm:$0xff] %v2581_v5  ;;  %vm243_vm12 = vmand %vm150_vm0, %vm199_vm9  ;;  %v2599_v61 = vsel %vm242_vm10, 1.0, %v4150_v46  ;;  %v2617_v22 = vsub.f32 %v2208_v4, %v2308_v23  ;;  %v2621_v17 = vsub.f32 %v2213_v6, %v2308_v23  ;;  %v2632_v18 = vsub.f32 %v2251_v16, %v2198_v2  ;;  %v808_v1 = vpop.permute.xlu0 %807 }
  0xa2   :  { %4149 = vst [vmem:[#allocation41_spill] sm:$0xff] %v2583_v33  ;;  %4151 = vst [vmem:[#allocation42_spill] sm:$0xff] %v2603_v43  ;;  %v2609_v39 = vsel %vm243_vm12, 1.0, %v4150_v46  ;;  %v484_v15 = vmul.f32 %v443_v47, %v2603_v43  ;;  %v2636_v57 = vsub.f32 %v2251_v16, %v2203_v3  ;;  %v485_v49 = vmul.f32 %v443_v47, %v2613_v0  ;;  %v2644_v37 = vpop.permute.xlu1 %812 }
  0xa3   :  { %vm244_vm4 = vmand %vm151_vm6, %vm200_vm13  ;;  %4152 = vst [vmem:[#allocation43_spill] sm:$0xff] %v2613_v0  ;;  %v486_v7 = vmul.f32 %v443_v47, %v2617_v22  ;;  %v487_v9 = vmul.f32 %v443_v47, %v2621_v17  ;;  %v2651_v58 = vsub.f32 %v2251_v16, %v2208_v4  ;;  %v2655_v42 = vsub.f32 %v2251_v16, %v2213_v6 }
  0xa4   :  { %4153 = vst [vmem:[#allocation44_spill] sm:$0xff] %v2617_v22  ;;  %4154 = vst [vmem:[#allocation45_spill] sm:$0xff] %v2621_v17  ;;  %v2627_v5 = vsel %vm244_vm4, 1.0, %v4150_v46  ;;  %v2647_v29 = vmul.f32 %v2599_v61, %v484_v15  ;;  %v654_v41 = vmul.f32 %v613_v44, %v2632_v18  ;;  %v2659_v40 = vmul.f32 %v2609_v39, %v485_v49 }
  0xa5   :  { %vm245_vm5 = vmand %vm152_vm7, %vm201_vm3  ;;  %4155 = vst [vmem:[#allocation46_spill] sm:$0xff] %v2632_v18  ;;  %v2662_v47 = vmul.f32 %v2627_v5, %v486_v7  ;;  %v655_v15 = vmul.f32 %v613_v44, %v2636_v57  ;;  %v656_v55 = vmul.f32 %v613_v44, %v2651_v58  ;;  %v657_v54 = vmul.f32 %v613_v44, %v2655_v42 }
  0xa6   :  { %4156 = vst [vmem:[#allocation47_spill] sm:$0xff] %v2636_v57  ;;  %v2639_v33 = vsel %vm245_vm5, 1.0, %v4150_v46  ;;  %4157 = vst [vmem:[#allocation48_spill] sm:$0xff] %v2651_v58  ;;  %v2671_v16 = vmul.f32 %v2292_v19, %v654_v41  ;;  %vm145_vm14 = vcmp.ge.f32.partialorder %v2198_v2, %v2509_v48  ;;  %vm146_vm11 = vcmp.ge.f32.partialorder %v2203_v3, %v2509_v48  ;;  %v925_v41 = vpop.permute.xlu0 %924 }
  0xa7   :  { %4158 = vst [vmem:[#allocation49_spill] sm:$0xff] %v2655_v42  ;;  %v2665_v36 = vmul.f32 %v2639_v33, %v487_v9  ;;  %v2676_v49 = vmul.f32 %v2317_v24, %v655_v15  ;;  %vm147_vm15 = vcmp.ge.f32.partialorder %v2208_v4, %v2509_v48  ;;  %vm148_vm1 = vcmp.ge.f32.partialorder %v2213_v6, %v2509_v48  ;;  %v930_v24 = vpop.permute.xlu1 %929 }
  0xa8   :  { %v2685_v9 = vmul.f32 %v2336_v27, %v656_v55  ;;  %v2688_v19 = vmul.f32 %v2345_v28, %v657_v54  ;;  %vm194_vm2 = vcmp.lt.f32.partialorder %v2198_v2, %v2308_v23  ;;  %vm195_vm0 = vcmp.lt.f32.partialorder %v2203_v3, %v2308_v23 }
  0xa9   :  { %vm196_vm6 = vcmp.lt.f32.partialorder %v2208_v4, %v2308_v23  ;;  %vm197_vm7 = vcmp.lt.f32.partialorder %v2213_v6, %v2308_v23  ;;  %vm238_vm8 = vmand %vm145_vm14, %vm194_vm2  ;;  %v2700_v27 = vsub.f32 %v2198_v2, %v2509_v48  ;;  %v2704_v28 = vsub.f32 %v2203_v3, %v2509_v48 }
  0xaa   :  { %vm239_vm9 = vmand %vm146_vm11, %vm195_vm0  ;;  %v2707_v54 = vsel %vm238_vm8, 1.0, %v4150_v46  ;;  %v2711_v55 = vsub.f32 %v2208_v4, %v2509_v48  ;;  %v2715_v7 = vsub.f32 %v2213_v6, %v2509_v48  ;;  %v2719_v44 = vsub.f32 %v2217_v8, %v2198_v2 }
  0xab   :  { %4159 = vst [vmem:[#allocation50_spill] sm:$0xff] %v2700_v27  ;;  %4160 = vst [vmem:[#allocation51_spill] sm:$0xff] %v2704_v28  ;;  %v2725_v15 = vsel %vm239_vm9, 1.0, %v4150_v46  ;;  %v480_v42 = vmul.f32 %v2587_v45, %v2700_v27  ;;  %v481_v58 = vmul.f32 %v2587_v45, %v2704_v28  ;;  %v2733_v57 = vsub.f32 %v2217_v8, %v2203_v3 }
  0xac   :  { %4161 = vst [vmem:[#allocation52_spill] sm:$0xff] %v2711_v55  ;;  %4162 = vst [vmem:[#allocation53_spill] sm:$0xff] %v2715_v7  ;;  %v482_v27 = vmul.f32 %v2587_v45, %v2711_v55  ;;  %v483_v28 = vmul.f32 %v2587_v45, %v2715_v7  ;;  %v2750_v50 = vsub.f32 %v2217_v8, %v2208_v4 }
  0xad   :  { %4163 = vst [vmem:[#allocation54_spill] sm:$0xff] %v2719_v44  ;;  %vm240_vm10 = vmand %vm147_vm15, %vm196_vm6  ;;  %v2756_v35 = vmul.f32 %v2707_v54, %v480_v42  ;;  %v2759_v52 = vmul.f32 %v2725_v15, %v481_v58  ;;  %v2763_v31 = vsub.f32 %v2217_v8, %v2213_v6  ;;  %v650_v7 = vmul.f32 %v2589_v62, %v2719_v44 }
  0xae   :  { %4164 = vst [vmem:[#allocation55_spill] sm:$0xff] %v2733_v57  ;;  %vm241_vm13 = vmand %vm148_vm1, %vm197_vm7  ;;  %v2742_v18 = vsel %vm240_vm10, 1.0, %v4150_v46  ;;  %v651_v42 = vmul.f32 %v2589_v62, %v2733_v57  ;;  %v652_v58 = vmul.f32 %v2589_v62, %v2750_v50  ;;  %vm141_vm3 = vcmp.ge.f32.partialorder %v2198_v2, %v2556_v60 }
  0xaf   :  { %4165 = vst [vmem:[#allocation56_spill] sm:$0xff] %v2750_v50  ;;  %v2753_v53 = vsel %vm241_vm13, 1.0, %v4150_v46  ;;  %4166 = vst [vmem:[#allocation57_spill] sm:$0xff] %v2756_v35  ;;  %v2766_v55 = vmul.f32 %v2742_v18, %v482_v27  ;;  %v433_v35 = vpop.permute.xlu1 %432  ;;  %v653_v8 = vmul.f32 %v2589_v62, %v2763_v31  ;;  %v2783_v27 = vmul.f32 %v808_v1, %v2239_v12 }
  0xb0   :  { %4167 = vst [vmem:[#allocation58_spill] sm:$0xff] %v2759_v52  ;;  %4168 = vst [vmem:[#allocation59_spill] sm:$0xff] %v2763_v31  ;;  %v2769_v45 = vmul.f32 %v2753_v53, %v483_v28  ;;  %v2780_v52 = vmul.f32 %v808_v1, %v2235_v11  ;;  %v2785_v28 = vpop.permute.xlu0 %87  ;;  %v2788_v44 = vmul.f32 %v2599_v61, %v650_v7 }
  0xb1   :  { %v2791_v57 = vmul.f32 %v2609_v39, %v651_v42  ;;  %v2797_v50 = vmul.f32 %v808_v1, %v2247_v14  ;;  %v2800_v62 = vmul.f32 %v2627_v5, %v652_v58  ;;  %v2803_v31 = vmul.f32 %v2639_v33, %v653_v8 }
  0xb2   :  { %4169 = vst [vmem:[#allocation60_spill] sm:$0xff] %v2769_v45  ;;  %4170 = vst [vmem:[#allocation61_spill] sm:$0xff] %v2780_v52  ;;  %v2794_v45 = vmul.f32 %v808_v1, %v2243_v13  ;;  %v2807_v11 = vmul.f32 %v2644_v37, %v2298_v20  ;;  %v2811_v61 = vmul.f32 %v2644_v37, %v2302_v21 }
  0xb3   :  { %v2815_v39 = vmul.f32 %v2644_v37, %v2321_v25  ;;  %v2819_v1 = vmul.f32 %v2644_v37, %v2325_v26  ;;  %v2822_v5 = vmul.f32 %v925_v41, %v2479_v34  ;;  %v2825_v33 = vmul.f32 %v925_v41, %v2489_v56 }
  0xb4   :  { %4171 = vst [vmem:[#allocation62_spill] sm:$0xff] %v2794_v45  ;;  %4172 = vst [vmem:[#allocation63_spill] sm:$0xff] %v2807_v11  ;;  %v2828_v20 = vmul.f32 %v925_v41, %v2493_v59  ;;  %v2831_v21 = vmul.f32 %v925_v41, %v2497_v32  ;;  %v2834_v7 = vmul.f32 %v930_v24, %v2538_v38  ;;  %v803_v41 = vpop.permute.xlu1 %802 }
  0xb5   :  { %4173 = vst [vmem:[#allocation64_spill] sm:$0xff] %v2815_v39  ;;  %4174 = vst [vmem:[#allocation65_spill] sm:$0xff] %v2822_v5  ;;  %v2837_v25 = vmul.f32 %v930_v24, %v2546_v63  ;;  %v2840_v26 = vmul.f32 %v930_v24, %v2550_v10  ;;  %v2843_v37 = vmul.f32 %v930_v24, %v2554_v30  ;;  %v603_v24 = vpop.permute.xlu0 %602 }
  0xb6   :  { %4175 = vst [vmem:[#allocation66_spill] sm:$0xff] %v2828_v20  ;;  %4176 = vst [vmem:[#allocation67_spill] sm:$0xff] %v2834_v7  ;;  %vm142_vm12 = vcmp.ge.f32.partialorder %v2203_v3, %v2556_v60  ;;  %vm143_vm4 = vcmp.ge.f32.partialorder %v2208_v4, %v2556_v60  ;;  %vm144_vm5 = vcmp.ge.f32.partialorder %v2213_v6, %v2556_v60 }
  0xb7   :  { %4177 = vst [vmem:[#allocation68_spill] sm:$0xff] %v2840_v26  ;;  %vm190_vm14 = vcmp.lt.f32.partialorder %v2198_v2, %v2509_v48  ;;  %vm191_vm11 = vcmp.lt.f32.partialorder %v2203_v3, %v2509_v48  ;;  %vm192_vm15 = vcmp.lt.f32.partialorder %v2208_v4, %v2509_v48  ;;  %vm193_vm1 = vcmp.lt.f32.partialorder %v2213_v6, %v2509_v48 }
  0xb8   :  { %vm234_vm2 = vmand %vm141_vm3, %vm190_vm14  ;;  %v2863_v42 = vsub.f32 %v2198_v2, %v2556_v60  ;;  %v2867_v58 = vsub.f32 %v2203_v3, %v2556_v60  ;;  %v2874_v32 = vsub.f32 %v2208_v4, %v2556_v60  ;;  %v2878_v59 = vsub.f32 %v2213_v6, %v2556_v60  ;;  %v2921_v7 = vpop.permute.xlu1 %82 }
  0xb9   :  { %vm235_vm0 = vmand %vm142_vm12, %vm191_vm11  ;;  %v2870_v8 = vsel %vm234_vm2, 1.0, %v4150_v46  ;;  %v2882_v56 = vadd.f32 %v2671_v16, %v2647_v29  ;;  %v2894_v39 = vadd.f32 %v2676_v49, %v2659_v40  ;;  %v2906_v13 = vadd.f32 %v2685_v9, %v2662_v47  ;;  %v920_v5 = vpop.permute.xlu0 %919 }
  0xba   :  { %4178 = vst [vmem:[#allocation69_spill] sm:$0xff] %v2863_v42  ;;  %4179 = vst [vmem:[#allocation70_spill] sm:$0xff] %v2867_v58  ;;  %v2888_v34 = vsel %vm235_vm0, 1.0, %v4150_v46  ;;  %v476_v26 = vmul.f32 %v433_v35, %v2863_v42  ;;  %v477_v20 = vmul.f32 %v433_v35, %v2867_v58  ;;  %v478_v16 = vmul.f32 %v433_v35, %v2874_v32 }
  0xbb   :  { %4180 = vst [vmem:[#allocation71_spill] sm:$0xff] %v2874_v32  ;;  %4181 = vst [vmem:[#allocation72_spill] sm:$0xff] %v2878_v59  ;;  %v479_v10 = vmul.f32 %v433_v35, %v2878_v59  ;;  %v2919_v38 = vadd.f32 %v2688_v19, %v2665_v36  ;;  %v839_v9 = vmul.f32 %v803_v41, %v2603_v43  ;;  %v4190_v43 = vld [vmem:[#allocation23_spill] sm:$0xff]  ;;  %v4193_v59 = vld [vmem:[#allocation25_spill] sm:$0xff] }
  0xbc   :  { %vm236_vm6 = vmand %vm143_vm4, %vm192_vm15  ;;  %v2912_v40 = vmul.f32 %v2870_v8, %v476_v26  ;;  %v2915_v49 = vmul.f32 %v2888_v34, %v477_v20  ;;  %v840_v26 = vmul.f32 %v803_v41, %v2613_v0  ;;  %v841_v20 = vmul.f32 %v803_v41, %v2617_v22 }
  0xbd   :  { %vm237_vm7 = vmand %vm144_vm5, %vm193_vm1  ;;  %v2900_v29 = vsel %vm236_vm6, 1.0, %v4150_v46  ;;  %v842_v11 = vmul.f32 %v803_v41, %v2621_v17  ;;  %v2935_v36 = vsub.f32 %v2308_v23, %v2198_v2  ;;  %v2939_v19 = vsub.f32 %v2308_v23, %v2203_v3 }
  0xbe   :  { %v2909_v45 = vsel %vm237_vm7, 1.0, %v4150_v46  ;;  %v2924_v35 = vmul.f32 %v2900_v29, %v478_v16  ;;  %v2945_v16 = vmul.f32 %v840_v26, %v2894_v39  ;;  %v2949_v0 = vsub.f32 %v2308_v23, %v2208_v4 }
  0xbf   :  { %v2927_v47 = vmul.f32 %v2909_v45, %v479_v10  ;;  %4182 = vst [vmem:[#allocation73_spill] sm:$0xff] %v2935_v36  ;;  %4183 = vst [vmem:[#allocation74_spill] sm:$0xff] %v2939_v19  ;;  %v2942_v10 = vmul.f32 %v839_v9, %v2882_v56  ;;  %v2953_v41 = vsub.f32 %v2308_v23, %v2213_v6  ;;  %v4192_v23 = vld [vmem:[#allocation12_spill] sm:$0xff] }
  0xc0   :  { %4185 = vst [vmem:[#allocation76_spill] sm:$0xff] %v2945_v16  ;;  %4186 = vst [vmem:[#allocation77_spill] sm:$0xff] %v2949_v0  ;;  %v2956_v17 = vmul.f32 %v841_v20, %v2906_v13  ;;  %v2959_v22 = vmul.f32 %v842_v11, %v2919_v38  ;;  %v646_v9 = vmul.f32 %v603_v24, %v2935_v36 }
  0xc1   :  { %4184 = vst [vmem:[#allocation75_spill] sm:$0xff] %v2942_v10  ;;  %4187 = vst [vmem:[#allocation78_spill] sm:$0xff] %v2953_v41  ;;  %v647_v10 = vmul.f32 %v603_v24, %v2939_v19  ;;  %v648_v26 = vmul.f32 %v603_v24, %v2949_v0  ;;  %v649_v16 = vmul.f32 %v603_v24, %v2953_v41  ;;  %v4195_v19 = vld [vmem:[#allocation26_spill] sm:$0xff]  ;;  %v4198_v24 = vld [vmem:[#allocation27_spill] sm:$0xff] }
  0xc2   :  { %4188 = vst [vmem:[#allocation79_spill] sm:$0xff] %v2956_v17  ;;  %4189 = vst [vmem:[#allocation80_spill] sm:$0xff] %v2959_v22  ;;  %v2967_v52 = vadd.f32 %v4190_v43, %v2420_v51  ;;  %v2971_v32 = vadd.f32 %v4193_v59, %v4192_v23  ;;  %v2974_v20 = vmul.f32 %v2707_v54, %v646_v9  ;;  %v4194_v17 = vld [vmem:[#allocation13_spill] sm:$0xff]  ;;  %v4197_v0 = vld [vmem:[#allocation14_spill] sm:$0xff]  ;;  %v598_v51 = vpop.permute.xlu1 %597 }
  0xc3   :  { %v2977_v11 = vmul.f32 %v2725_v15, %v647_v10  ;;  %v2981_v36 = vadd.f32 %v4195_v19, %v4194_v17  ;;  %v2985_v41 = vadd.f32 %v4198_v24, %v4197_v0  ;;  %v2988_v43 = vmul.f32 %v2742_v18, %v648_v26  ;;  %v4199_v54 = vld [vmem:[#allocation8_spill] sm:$0xff]  ;;  %v4200_v23 = vld [vmem:[#allocation9_spill] sm:$0xff]  ;;  %v428_v10 = vpop.permute.xlu0 %427  ;;  %v4201_v22 = vld [vmem:[#allocation10_spill] sm:$0xff] }
  0xc4   :  { %4191 = vst [vmem:[#allocation23_spill] sm:$0xff] %v2967_v52  ;;  %v2991_v59 = vmul.f32 %v2753_v53, %v649_v16  ;;  %v956_v9 = vmul.f32 %v920_v5, %v4199_v54  ;;  %v957_v15 = vmul.f32 %v920_v5, %v4200_v23  ;;  %v958_v58 = vmul.f32 %v920_v5, %v4201_v22  ;;  %v4202_v17 = vld [vmem:[#allocation11_spill] sm:$0xff] }
  0xc5   :  { %4196 = vst [vmem:[#allocation12_spill] sm:$0xff] %v2981_v36  ;;  %v959_v19 = vmul.f32 %v920_v5, %v4202_v17  ;;  %vm137_vm8 = vcmp.ge.f32.partialorder %v2198_v2, %v2785_v28  ;;  %vm138_vm9 = vcmp.ge.f32.partialorder %v2203_v3, %v2785_v28  ;;  %vm139_vm10 = vcmp.ge.f32.partialorder %v2208_v4, %v2785_v28 }
  0xc6   :  { %v3002_v18 = vmul.f32 %v956_v9, %v2967_v52  ;;  %v3005_v53 = vmul.f32 %v957_v15, %v2971_v32  ;;  %vm140_vm13 = vcmp.ge.f32.partialorder %v2213_v6, %v2785_v28  ;;  %v3012_v0 = vmul.f32 %v958_v58, %v2981_v36 }
  0xc7   :  { %v3015_v5 = vmul.f32 %v959_v19, %v2985_v41  ;;  %vm186_vm3 = vcmp.lt.f32.partialorder %v2198_v2, %v2556_v60  ;;  %vm187_vm12 = vcmp.lt.f32.partialorder %v2203_v3, %v2556_v60  ;;  %vm188_vm4 = vcmp.lt.f32.partialorder %v2208_v4, %v2556_v60  ;;  %v915_v19 = vpop.permute.xlu1 %914 }
  0xc8   :  { %4203 = vst [vmem:[#allocation25_spill] sm:$0xff] %v3002_v18  ;;  %4204 = vst [vmem:[#allocation13_spill] sm:$0xff] %v3005_v53  ;;  %vm189_vm5 = vcmp.lt.f32.partialorder %v2213_v6, %v2556_v60  ;;  %v3027_v58 = vsub.f32 %v2198_v2, %v2785_v28  ;;  %v3031_v16 = vsub.f32 %v2203_v3, %v2785_v28 }
  0xc9   :  { %4205 = vst [vmem:[#allocation26_spill] sm:$0xff] %v3012_v0  ;;  %4206 = vst [vmem:[#allocation14_spill] sm:$0xff] %v3015_v5  ;;  %v3038_v24 = vsub.f32 %v2208_v4, %v2785_v28  ;;  %v3042_v9 = vsub.f32 %v2213_v6, %v2785_v28  ;;  %v3046_v15 = vsub.f32 %v2509_v48, %v2198_v2  ;;  %v798_v0 = vpop.permute.xlu0 %797 }
  0xca   :  { %vm230_vm14 = vmand %vm137_vm8, %vm186_vm3  ;;  %4207 = vst [vmem:[#allocation27_spill] sm:$0xff] %v3027_v58  ;;  %v472_v22 = vmul.f32 %v428_v10, %v3027_v58  ;;  %v473_v23 = vmul.f32 %v428_v10, %v3031_v16  ;;  %v3058_v54 = vsub.f32 %v2509_v48, %v2203_v3  ;;  %v3086_v60 = vsub.f32 %v2509_v48, %v2213_v6 }
  0xcb   :  { %4208 = vst [vmem:[#allocation81_spill] sm:$0xff] %v3031_v16  ;;  %vm231_vm11 = vmand %vm138_vm9, %vm187_vm12  ;;  %v3034_v26 = vsel %vm230_vm14, 1.0, %v4150_v46  ;;  %v474_v5 = vmul.f32 %v428_v10, %v3038_v24  ;;  %v475_v58 = vmul.f32 %v428_v10, %v3042_v9  ;;  %v3073_v16 = vsub.f32 %v2509_v48, %v2208_v4  ;;  %v4221_v48 = vld [vmem:[#allocation58_spill] sm:$0xff] }
  0xcc   :  { %4209 = vst [vmem:[#allocation82_spill] sm:$0xff] %v3038_v24  ;;  %4210 = vst [vmem:[#allocation83_spill] sm:$0xff] %v3042_v9  ;;  %v3052_v17 = vsel %vm231_vm11, 1.0, %v4150_v46  ;;  %v3079_v36 = vmul.f32 %v3034_v26, %v472_v22  ;;  %v642_v9 = vmul.f32 %v598_v51, %v3046_v15  ;;  %v643_v42 = vmul.f32 %v598_v51, %v3058_v54 }
  0xcd   :  { %4211 = vst [vmem:[#allocation84_spill] sm:$0xff] %v3046_v15  ;;  %vm232_vm15 = vmand %vm139_vm10, %vm188_vm4  ;;  %v3082_v52 = vmul.f32 %v3052_v17, %v473_v23  ;;  %v644_v22 = vmul.f32 %v598_v51, %v3073_v16  ;;  %v4220_v23 = vld [vmem:[#allocation57_spill] sm:$0xff]  ;;  %vm133_vm2 = vcmp.ge.f32.partialorder %v2198_v2, %v2921_v7  ;;  %vm134_vm0 = vcmp.ge.f32.partialorder %v2203_v3, %v2921_v7 }
  0xce   :  { %4212 = vst [vmem:[#allocation85_spill] sm:$0xff] %v3052_v17  ;;  %4213 = vst [vmem:[#allocation86_spill] sm:$0xff] %v3058_v54  ;;  %v3067_v18 = vsel %vm232_vm15, 1.0, %v4150_v46  ;;  %v3104_v17 = vadd.f32 %v2791_v57, %v4221_v48  ;;  %v3114_v54 = vadd.f32 %v2800_v62, %v2766_v55  ;;  %v3130_v48 = vpop.permute.xlu0 %1095  ;;  %v4226_v55 = vld [vmem:[#allocation52_spill] sm:$0xff]  ;;  %vm135_vm6 = vcmp.ge.f32.partialorder %v2208_v4, %v2921_v7 }
  0xcf   :  { %vm233_vm1 = vmand %vm140_vm13, %vm189_vm5  ;;  %4214 = vst [vmem:[#allocation87_spill] sm:$0xff] %v3073_v16  ;;  %v3089_v24 = vmul.f32 %v3067_v18, %v474_v5  ;;  %v3107_v5 = vmul.f32 %v2870_v8, %v642_v9  ;;  %v4222_v16 = vld [vmem:[#allocation60_spill] sm:$0xff]  ;;  %v4224_v8 = vld [vmem:[#allocation50_spill] sm:$0xff]  ;;  %v837_v62 = vmul.f32 %v798_v0, %v4226_v55  ;;  %vm136_vm7 = vcmp.ge.f32.partialorder %v2213_v6, %v2921_v7 }
  0xd0   :  { %v3076_v53 = vsel %vm233_vm1, 1.0, %v4150_v46  ;;  %4215 = vst [vmem:[#allocation88_spill] sm:$0xff] %v3079_v36  ;;  %4216 = vst [vmem:[#allocation89_spill] sm:$0xff] %v3082_v52  ;;  %v645_v36 = vmul.f32 %v598_v51, %v3086_v60  ;;  %v3100_v52 = vadd.f32 %v2788_v44, %v4220_v23  ;;  %v3118_v51 = vadd.f32 %v2803_v31, %v4222_v16  ;;  %v3120_v44 = vpop.permute.xlu1 %1199  ;;  %v4228_v31 = vld [vmem:[#allocation46_spill] sm:$0xff] }
  0xd1   :  { %4217 = vst [vmem:[#allocation90_spill] sm:$0xff] %v3086_v60  ;;  %4218 = vst [vmem:[#allocation91_spill] sm:$0xff] %v3089_v24  ;;  %v3092_v10 = vmul.f32 %v3076_v53, %v475_v58  ;;  %v3110_v58 = vmul.f32 %v2888_v34, %v643_v42  ;;  %v3123_v23 = vmul.f32 %v2900_v29, %v644_v22  ;;  %v4225_v34 = vld [vmem:[#allocation51_spill] sm:$0xff]  ;;  %v4227_v60 = vld [vmem:[#allocation53_spill] sm:$0xff] }
  0xd2   :  { %v3126_v57 = vmul.f32 %v2909_v45, %v645_v36  ;;  %v835_v9 = vmul.f32 %v798_v0, %v4224_v8  ;;  %v836_v42 = vmul.f32 %v798_v0, %v4225_v34  ;;  %v838_v15 = vmul.f32 %v798_v0, %v4227_v60  ;;  %v4231_v36 = vld [vmem:[#allocation48_spill] sm:$0xff]  ;;  %v4232_v8 = vld [vmem:[#allocation49_spill] sm:$0xff] }
  0xd3   :  { %4219 = vst [vmem:[#allocation92_spill] sm:$0xff] %v3092_v10  ;;  %v952_v16 = vmul.f32 %v915_v19, %v4228_v31  ;;  %v4229_v10 = vld [vmem:[#allocation47_spill] sm:$0xff]  ;;  %v954_v22 = vmul.f32 %v915_v19, %v4231_v36  ;;  %v955_v34 = vmul.f32 %v915_v19, %v4232_v8  ;;  %vm182_vm8 = vcmp.lt.f32.partialorder %v2198_v2, %v2785_v28  ;;  %v4244_v31 = vld [vmem:[#allocation20_spill] sm:$0xff] }
  0xd4   :  { %4223 = vst [vmem:[#allocation57_spill] sm:$0xff] %v3126_v57  ;;  %v953_v24 = vmul.f32 %v915_v19, %v4229_v10  ;;  %v3137_v29 = vmul.f32 %v835_v9, %v3100_v52  ;;  %v3140_v45 = vmul.f32 %v836_v42, %v3104_v17  ;;  %v3145_v57 = vmul.f32 %v837_v62, %v3114_v54  ;;  %vm226_vm3 = vmand %vm133_vm2, %vm182_vm8  ;;  %v4243_v62 = vld [vmem:[#allocation32_spill] sm:$0xff] }
  0xd5   :  { %v3148_v55 = vmul.f32 %v838_v15, %v3118_v51  ;;  %v3151_v0 = vmul.f32 %v952_v16, %v2882_v56  ;;  %v3157_v9 = vmul.f32 %v954_v22, %v2906_v13  ;;  %v3160_v42 = vmul.f32 %v955_v34, %v2919_v38  ;;  %v423_v15 = vpop.permute.xlu1 %422  ;;  %v3186_v38 = vpop.permute.xlu0 %77  ;;  %v4242_v34 = vld [vmem:[#allocation16_spill] sm:$0xff] }
  0xd6   :  { %4230 = vst [vmem:[#allocation58_spill] sm:$0xff] %v3137_v29  ;;  %4233 = vst [vmem:[#allocation60_spill] sm:$0xff] %v3145_v57  ;;  %v3154_v10 = vmul.f32 %v953_v24, %v2894_v39  ;;  %vm183_vm9 = vcmp.lt.f32.partialorder %v2203_v3, %v2785_v28  ;;  %vm184_vm10 = vcmp.lt.f32.partialorder %v2208_v4, %v2785_v28  ;;  %v3189_v39 = vsel %vm226_vm3, 1.0, %v4150_v46 }
  0xd7   :  { %4234 = vst [vmem:[#allocation53_spill] sm:$0xff] %v3148_v55  ;;  %4235 = vst [vmem:[#allocation93_spill] sm:$0xff] %v3151_v0  ;;  %vm185_vm13 = vcmp.lt.f32.partialorder %v2213_v6, %v2785_v28  ;;  %v3180_v13 = vsub.f32 %v2198_v2, %v2921_v7  ;;  %v3184_v56 = vsub.f32 %v2203_v3, %v2921_v7 }
  0xd8   :  { %4236 = vst [vmem:[#allocation94_spill] sm:$0xff] %v3157_v9  ;;  %4237 = vst [vmem:[#allocation95_spill] sm:$0xff] %v3160_v42  ;;  %v3193_v24 = vsub.f32 %v2208_v4, %v2921_v7  ;;  %v3197_v19 = vsub.f32 %v2213_v6, %v2921_v7  ;;  %v743_v16 = vadd.f32 %v4243_v62, %v4242_v34  ;;  %v4245_v9 = vld [vmem:[#allocation39_spill] sm:$0xff] }
  0xd9   :  { %4238 = vst [vmem:[#allocation96_spill] sm:$0xff] %v3180_v13  ;;  %4239 = vst [vmem:[#allocation97_spill] sm:$0xff] %v3184_v56  ;;  %v468_v8 = vmul.f32 %v423_v15, %v3180_v13  ;;  %v469_v36 = vmul.f32 %v423_v15, %v3184_v56  ;;  %v747_v57 = vadd.f32 %v4245_v9, %v4244_v31 }
  0xda   :  { %vm227_vm12 = vmand %vm134_vm0, %vm183_vm9  ;;  %4240 = vst [vmem:[#allocation98_spill] sm:$0xff] %v3193_v24  ;;  %v470_v62 = vmul.f32 %v423_v15, %v3193_v24  ;;  %v471_v0 = vmul.f32 %v423_v15, %v3197_v19  ;;  %v880_v29 = vmul.f32 %v2783_v27, %v2971_v32  ;;  %v884_v13 = vmul.f32 %v2811_v61, %v743_v16  ;;  %v4251_v61 = vld [vmem:[#allocation22_spill] sm:$0xff] }
  0xdb   :  { %4241 = vst [vmem:[#allocation99_spill] sm:$0xff] %v3197_v19  ;;  %vm228_vm4 = vmand %vm135_vm6, %vm184_vm10  ;;  %v3205_v22 = vsel %vm227_vm12, 1.0, %v4150_v46  ;;  %v3228_v31 = vmul.f32 %v3189_v39, %v468_v8  ;;  %v997_v15 = vmul.f32 %v2825_v33, %v743_v16  ;;  %v1001_v32 = vmul.f32 %v2837_v25, %v747_v57  ;;  %v4250_v19 = vld [vmem:[#allocation34_spill] sm:$0xff] }
  0xdc   :  { %vm229_vm5 = vmand %vm136_vm7, %vm185_vm13  ;;  %v3218_v34 = vsel %vm228_vm4, 1.0, %v4150_v46  ;;  %v3231_v9 = vmul.f32 %v3205_v22, %v469_v36  ;;  %v1127_v27 = vmul.f32 %v3130_v48, %v2239_v12  ;;  %v1231_v8 = vmul.f32 %v3120_v44, %v2546_v63  ;;  %v4249_v36 = vld [vmem:[#allocation18_spill] sm:$0xff]  ;;  %v793_v12 = vpop.permute.xlu1 %792 }
  0xdd   :  { %v3225_v56 = vsel %vm229_vm5, 1.0, %v4150_v46  ;;  %4246 = vst [vmem:[#allocation16_spill] sm:$0xff] %v3228_v31  ;;  %v3235_v42 = vmul.f32 %v3218_v34, %v470_v62  ;;  %v4252_v31 = vld [vmem:[#allocation41_spill] sm:$0xff]  ;;  %v3250_v55 = vadd.f32 %v997_v15, %v880_v29  ;;  %v882_v33 = vmul.f32 %v2797_v50, %v2985_v41  ;;  %v4255_v15 = vld [vmem:[#allocation71_spill] sm:$0xff] }
  0xde   :  { %4247 = vst [vmem:[#allocation32_spill] sm:$0xff] %v3231_v9  ;;  %v3238_v24 = vmul.f32 %v3225_v56, %v471_v0  ;;  %v745_v9 = vadd.f32 %v4250_v19, %v4249_v36  ;;  %v749_v62 = vadd.f32 %v4252_v31, %v4251_v61  ;;  %v1037_v0 = vadd.f32 %v1001_v32, %v884_v13  ;;  %v4253_v41 = vld [vmem:[#allocation69_spill] sm:$0xff] }
  0xdf   :  { %4248 = vst [vmem:[#allocation20_spill] sm:$0xff] %v3235_v42  ;;  %v593_v42 = vpop.permute.xlu0 %592  ;;  %v1129_v25 = vmul.f32 %v3130_v48, %v2247_v14  ;;  %v1233_v16 = vmul.f32 %v3120_v44, %v2554_v30  ;;  %v1159_v29 = vmul.f32 %v1127_v27, %v3250_v55  ;;  %v3264_v13 = vadd.f32 %v2974_v20, %v2912_v40  ;;  %v4254_v40 = vld [vmem:[#allocation70_spill] sm:$0xff]  ;;  %v4256_v27 = vld [vmem:[#allocation72_spill] sm:$0xff]  ;;  %v4257_v36 = vld [vmem:[#allocation37_spill] sm:$0xff] }
  0xe0   :  { %v886_v57 = vmul.f32 %v2819_v1, %v745_v9  ;;  %v999_v63 = vmul.f32 %v2831_v21, %v745_v9  ;;  %v1003_v19 = vmul.f32 %v2843_v37, %v749_v62  ;;  %v1263_v31 = vmul.f32 %v1231_v8, %v1037_v0  ;;  %v1091_v0 = vpop.permute.xlu1 %1090 }
  0xe1   :  { %v3268_v14 = vadd.f32 %v2977_v11, %v2915_v49  ;;  %v3274_v21 = vadd.f32 %v2988_v43, %v2924_v35  ;;  %v3278_v30 = vadd.f32 %v2991_v59, %v2927_v47  ;;  %v831_v9 = vmul.f32 %v793_v12, %v4253_v41 }
  0xe2   :  { %v3270_v50 = vadd.f32 %v999_v63, %v882_v33  ;;  %v1039_v1 = vadd.f32 %v1003_v19, %v886_v57  ;;  %v1295_v37 = vadd.f32 %v1263_v31, %v1159_v29  ;;  %v832_v20 = vmul.f32 %v793_v12, %v4254_v40  ;;  %v4266_v19 = vld [vmem:[#allocation15_spill] sm:$0xff]  ;;  %v4269_v31 = vld [vmem:[#allocation38_spill] sm:$0xff] }
  0xe3   :  { %v833_v32 = vmul.f32 %v793_v12, %v4255_v15  ;;  %v834_v8 = vmul.f32 %v793_v12, %v4256_v27  ;;  %v3287_v35 = vsub.f32 %v4257_v36, %v2198_v2  ;;  %v910_v43 = vpop.permute.xlu0 %909  ;;  %v3290_v47 = vmul.f32 %v831_v9, %v3264_v13  ;;  %v4268_v29 = vld [vmem:[#allocation19_spill] sm:$0xff] }
  0xe4   :  { %v1161_v49 = vmul.f32 %v1129_v25, %v3270_v50  ;;  %v1265_v11 = vmul.f32 %v1233_v16, %v1039_v1  ;;  %1325 = vmatprep.subr.mxu0 %v1295_v37  ;;  %v3293_v59 = vmul.f32 %v832_v20, %v3268_v14  ;;  %v3300_v62 = vsub.f32 %v4257_v36, %v2203_v3  ;;  %v4267_v3 = vld [vmem:[#allocation31_spill] sm:$0xff]  ;;  %v4271_v20 = vld [vmem:[#allocation61_spill] sm:$0xff] }
  0xe5   :  { %4258 = vst [vmem:[#allocation39_spill] sm:$0xff] %v3287_v35  ;;  %4259 = vst [vmem:[#allocation18_spill] sm:$0xff] %v3290_v47  ;;  %v3296_v61 = vmul.f32 %v833_v32, %v3274_v21  ;;  %v3303_v2 = vmul.f32 %v834_v8, %v3278_v30  ;;  %v3307_v25 = vsub.f32 %v4257_v36, %v2208_v4  ;;  %v4270_v9 = vld [vmem:[#allocation23_spill] sm:$0xff]  ;;  %v4273_v8 = vld [vmem:[#allocation85_spill] sm:$0xff] }
  0xe6   :  { %4260 = vst [vmem:[#allocation34_spill] sm:$0xff] %v3293_v59  ;;  %4262 = vst [vmem:[#allocation41_spill] sm:$0xff] %v3300_v62  ;;  %v1297_v33 = vadd.f32 %v1265_v11, %v1161_v49  ;;  %v3311_v12 = vsub.f32 %v4257_v36, %v2213_v6  ;;  %v638_v57 = vmul.f32 %v593_v42, %v3287_v35  ;;  %v4272_v6 = vld [vmem:[#allocation6_spill] sm:$0xff]  ;;  %v3350_v59 = vpop.permute.xlu1 %72 }
  0xe7   :  { %4261 = vst [vmem:[#allocation22_spill] sm:$0xff] %v3296_v61  ;;  %4263 = vst [vmem:[#allocation69_spill] sm:$0xff] %v3303_v2  ;;  %v639_v63 = vmul.f32 %v593_v42, %v3300_v62  ;;  %v742_v16 = vadd.f32 %v4267_v3, %v4266_v19  ;;  %v746_v1 = vadd.f32 %v4269_v31, %v4268_v29  ;;  %v4274_v19 = vld [vmem:[#allocation63_spill] sm:$0xff]  ;;  %v4275_v29 = vld [vmem:[#allocation65_spill] sm:$0xff] }
  0xe8   :  { %4264 = vst [vmem:[#allocation70_spill] sm:$0xff] %v3307_v25  ;;  %4265 = vst [vmem:[#allocation37_spill] sm:$0xff] %v3311_v12  ;;  %1402 = vmatprep.subr.mxu1 %v1297_v33  ;;  %v640_v37 = vmul.f32 %v593_v42, %v3307_v25  ;;  %v641_v4 = vmul.f32 %v593_v42, %v3311_v12  ;;  %v879_v32 = vmul.f32 %v4271_v20, %v4270_v9  ;;  %v4276_v9 = vld [vmem:[#allocation67_spill] sm:$0xff]  ;;  %v4281_v2 = vld [vmem:[#allocation40_spill] sm:$0xff] }
  0xe9   :  { %v1126_v49 = vmul.f32 %v3130_v48, %v4272_v6  ;;  %v3326_v11 = vmul.f32 %v3034_v26, %v638_v57  ;;  %v3329_v36 = vmul.f32 %v4273_v8, %v639_v63  ;;  %v883_v3 = vmul.f32 %v4274_v19, %v742_v16  ;;  %v4277_v61 = vld [vmem:[#allocation35_spill] sm:$0xff]  ;;  %v1195_v26 = vpop.permute.xlu0 %1194  ;;  %v4278_v63 = vld [vmem:[#allocation17_spill] sm:$0xff]  ;;  %v4289_v25 = vld [vmem:[#allocation68_spill] sm:$0xff] }
  0xea   :  { %v996_v33 = vmul.f32 %v4275_v29, %v742_v16  ;;  %v3334_v31 = vmul.f32 %v3067_v18, %v640_v37  ;;  %v3337_v42 = vmul.f32 %v3076_v53, %v641_v4  ;;  %v1000_v20 = vmul.f32 %v4276_v9, %v746_v1  ;;  %v4279_v8 = vld [vmem:[#allocation33_spill] sm:$0xff]  ;;  %v4282_v29 = vld [vmem:[#allocation12_spill] sm:$0xff]  ;;  %v4283_v18 = vld [vmem:[#allocation62_spill] sm:$0xff] }
  0xeb   :  { %v1230_v6 = vmul.f32 %v3120_v44, %v4277_v61  ;;  %v744_v47 = vadd.f32 %v4279_v8, %v4278_v63  ;;  %v4280_v19 = vld [vmem:[#allocation21_spill] sm:$0xff]  ;;  %v881_v37 = vmul.f32 %v4283_v18, %v4282_v29  ;;  %v4284_v4 = vld [vmem:[#allocation7_spill] sm:$0xff]  ;;  %v4285_v9 = vld [vmem:[#allocation36_spill] sm:$0xff] }
  0xec   :  { %v3342_v57 = vadd.f32 %v996_v33, %v879_v32  ;;  %v748_v16 = vadd.f32 %v4281_v2, %v4280_v19  ;;  %v1036_v53 = vadd.f32 %v1000_v20, %v883_v3  ;;  %v1128_v1 = vmul.f32 %v3130_v48, %v4284_v4  ;;  %v4286_v32 = vld [vmem:[#allocation42_spill] sm:$0xff]  ;;  %v4287_v8 = vld [vmem:[#allocation64_spill] sm:$0xff]  ;;  %v4290_v62 = vld [vmem:[#allocation43_spill] sm:$0xff] }
  0xed   :  { %v1232_v61 = vmul.f32 %v3120_v44, %v4285_v9  ;;  %v3357_v33 = vmul.f32 %v1091_v0, %v4286_v32  ;;  %v885_v12 = vmul.f32 %v4287_v8, %v744_v47  ;;  %v4288_v2 = vld [vmem:[#allocation66_spill] sm:$0xff]  ;;  %v3364_v3 = vmul.f32 %v1091_v0, %v4290_v62  ;;  %v4291_v20 = vld [vmem:[#allocation44_spill] sm:$0xff]  ;;  %v4292_v4 = vld [vmem:[#allocation45_spill] sm:$0xff] }
  0xee   :  { %v1158_v63 = vmul.f32 %v1126_v49, %v3342_v57  ;;  %v998_v19 = vmul.f32 %v4288_v2, %v744_v47  ;;  %v1002_v29 = vmul.f32 %v4289_v25, %v748_v16  ;;  %v1262_v18 = vmul.f32 %v1230_v6, %v1036_v53  ;;  %v4293_v49 = vld [vmem:[#allocation54_spill] sm:$0xff]  ;;  %v4294_v8 = vld [vmem:[#allocation55_spill] sm:$0xff]  ;;  %v4295_v2 = vld [vmem:[#allocation56_spill] sm:$0xff] }
  0xef   :  { %v3367_v48 = vmul.f32 %v1091_v0, %v4291_v20  ;;  %v3370_v44 = vmul.f32 %v1091_v0, %v4292_v4  ;;  %v948_v35 = vmul.f32 %v910_v43, %v4293_v49  ;;  %v949_v27 = vmul.f32 %v910_v43, %v4294_v8  ;;  %v4296_v6 = vld [vmem:[#allocation59_spill] sm:$0xff]  ;;  %v4297_v62 = vld [vmem:[#allocation24_spill] sm:$0xff]  ;;  %v418_v20 = vpop.permute.xlu0 %417  ;;  %v4303_v4 = vld [vmem:[#allocation29_spill] sm:$0xff] }
  0xf0   :  { %v3372_v9 = vadd.f32 %v998_v19, %v881_v37  ;;  %v1038_v32 = vadd.f32 %v1002_v29, %v885_v12  ;;  %v1294_v47 = vadd.f32 %v1262_v18, %v1158_v63  ;;  %v950_v25 = vmul.f32 %v910_v43, %v4295_v2  ;;  %v588_v19 = vpop.permute.xlu1 %587  ;;  %v4302_v29 = vld [vmem:[#allocation28_spill] sm:$0xff] }
  0xf1   :  { %v951_v16 = vmul.f32 %v910_v43, %v4296_v6  ;;  %v3379_v53 = vmul.f32 %v1195_v26, %v4297_v62  ;;  %v3383_v37 = vmul.f32 %v948_v35, %v3100_v52  ;;  %v3386_v12 = vmul.f32 %v949_v27, %v3104_v17  ;;  %v3402_v17 = vld [vmem:[%s3979_s0] sm:$0xff] }
  0xf2   :  { %v1160_v15 = vmul.f32 %v1128_v1, %v3372_v9  ;;  %v1264_v0 = vmul.f32 %v1232_v61, %v1038_v32  ;;  %1326 = vmatpush1.msra.mxu0 %v1294_v47  ;;  %v3389_v63 = vmul.f32 %v950_v25, %v3114_v54  ;;  %v1227_v18 = vmul.f32 %v1195_v26, %v4302_v29  ;;  %v4304_v61 = vld [vmem:[#allocation30_spill] sm:$0xff]  ;;  %v3409_v54 = vld [vmem:[%s3979_s0 + $0x8] sm:$0xff] }
  0xf3   :  { %4298 = vst [vmem:[#allocation15_spill] sm:$0xff] %v3383_v37  ;;  %4299 = vst [vmem:[#allocation31_spill] sm:$0xff] %v3386_v12  ;;  %v3392_v43 = vmul.f32 %v951_v16, %v3118_v51  ;;  %v3396_v62 = vmul.f32 %v1195_v26, %v4303_v4  ;;  %v1229_v52 = vmul.f32 %v1195_v26, %v4304_v61  ;;  %v3416_v51 = vld [vmem:[%s3979_s0 + $0x10] sm:$0xff]  ;;  %v788_v16 = vpop.permute.xlu0 %787 }
  0xf4   :  { %4300 = vst [vmem:[#allocation19_spill] sm:$0xff] %v3389_v63  ;;  %v1296_v1 = vadd.f32 %v1264_v0, %v1160_v15  ;;  %4305 = vst [vmem:[#allocation23_spill] sm:$0xff] %v3402_v17  ;;  %vm129_vm14 = vcmp.ge.f32.partialorder %v3402_v17, %v3186_v38  ;;  %vm130_vm11 = vcmp.ge.f32.partialorder %v3409_v54, %v3186_v38  ;;  %v3423_v15 = vld [vmem:[%s3979_s0 + $0x18] sm:$0xff]  ;;  %v905_v61 = vpop.permute.xlu1 %904 }
  0xf5   :  { %4301 = vst [vmem:[#allocation38_spill] sm:$0xff] %v3392_v43  ;;  %4306 = vst [vmem:[#allocation61_spill] sm:$0xff] %v3409_v54  ;;  %vm131_vm15 = vcmp.ge.f32.partialorder %v3416_v51, %v3186_v38  ;;  %vm132_vm1 = vcmp.ge.f32.partialorder %v3423_v15, %v3186_v38  ;;  %vm178_vm2 = vcmp.lt.f32.partialorder %v3402_v17, %v2921_v7 }
  0xf6   :  { %4307 = vst [vmem:[#allocation6_spill] sm:$0xff] %v3416_v51  ;;  %4308 = vst [vmem:[#allocation85_spill] sm:$0xff] %v3423_v15  ;;  %vm179_vm0 = vcmp.lt.f32.partialorder %v3409_v54, %v2921_v7  ;;  %1403 = vmatpush1.msra.mxu1 %v1296_v1  ;;  %vm180_vm6 = vcmp.lt.f32.partialorder %v3416_v51, %v2921_v7  ;;  %vm181_vm7 = vcmp.lt.f32.partialorder %v3423_v15, %v2921_v7 }
  0xf7   :  { %vm222_vm8 = vmand %vm129_vm14, %vm178_vm2  ;;  %v3437_v27 = vsub.f32 %v3402_v17, %v3186_v38  ;;  %v3441_v35 = vsub.f32 %v3409_v54, %v3186_v38  ;;  %v3448_v32 = vsub.f32 %v3416_v51, %v3186_v38  ;;  %v3452_v47 = vsub.f32 %v3423_v15, %v3186_v38 }
  0xf8   :  { %vm223_vm9 = vmand %vm130_vm11, %vm179_vm0  ;;  %v3444_v26 = vsel %vm222_vm8, 1.0, %v4150_v46  ;;  %v3456_v25 = vsub.f32 %v2785_v28, %v3402_v17  ;;  %v3468_v1 = vsub.f32 %v2785_v28, %v3409_v54  ;;  %v3483_v2 = vsub.f32 %v2785_v28, %v3416_v51 }
  0xf9   :  { %4309 = vst [vmem:[#allocation63_spill] sm:$0xff] %v3437_v27  ;;  %4310 = vst [vmem:[#allocation65_spill] sm:$0xff] %v3441_v35  ;;  %v3462_v0 = vsel %vm223_vm9, 1.0, %v4150_v46  ;;  %v464_v29 = vmul.f32 %v418_v20, %v3437_v27  ;;  %v465_v4 = vmul.f32 %v418_v20, %v3441_v35  ;;  %v466_v37 = vmul.f32 %v418_v20, %v3448_v32 }
  0xfa   :  { %4311 = vst [vmem:[#allocation67_spill] sm:$0xff] %v3448_v32  ;;  %4312 = vst [vmem:[#allocation35_spill] sm:$0xff] %v3452_v47  ;;  %v467_v6 = vmul.f32 %v418_v20, %v3452_v47  ;;  %v3496_v12 = vsub.f32 %v2785_v28, %v3423_v15  ;;  %v634_v47 = vmul.f32 %v588_v19, %v3456_v25  ;;  %vm1302_vm8 = vcmask 523264  }
  0xfb   :  { %4313 = vst [vmem:[#allocation17_spill] sm:$0xff] %v3456_v25  ;;  %vm224_vm10 = vmand %vm131_vm15, %vm180_vm6  ;;  %v3489_v49 = vmul.f32 %v3444_v26, %v464_v29  ;;  %v3492_v43 = vmul.f32 %v3462_v0, %v465_v4  ;;  %v635_v35 = vmul.f32 %v588_v19, %v3468_v1  ;;  %v636_v29 = vmul.f32 %v588_v19, %v3483_v2  ;;  %v4321_v4 = vld [vmem:[#allocation76_spill] sm:$0xff]  ;;  %v4326_v25 = vld [vmem:[#allocation14_spill] sm:$0xff] }
  0xfc   :  { %4314 = vst [vmem:[#allocation33_spill] sm:$0xff] %v3468_v1  ;;  %vm225_vm13 = vmand %vm132_vm1, %vm181_vm7  ;;  %v3477_v63 = vsel %vm224_vm10, 1.0, %v4150_v46  ;;  %v637_v27 = vmul.f32 %v588_v19, %v3496_v12  ;;  %v1259_v28 = vmul.f32 %v1227_v18, %v3250_v55  ;;  %v1086_v1 = vpop.permute.xlu0 %1085  ;;  %v1190_v18 = vpop.permute.xlu1 %1189  ;;  %vm125_vm3 = vcmp.ge.f32.partialorder %v3402_v17, %v3350_v59 }
  0xfd   :  { %4315 = vst [vmem:[#allocation21_spill] sm:$0xff] %v3483_v2  ;;  %v3486_v8 = vsel %vm225_vm13, 1.0, %v4150_v46  ;;  %4316 = vst [vmem:[#allocation40_spill] sm:$0xff] %v3489_v49  ;;  %v3499_v32 = vmul.f32 %v3477_v63, %v466_v37  ;;  %v3514_v37 = vmul.f32 %v3189_v39, %v634_v47  ;;  %v1261_v2 = vmul.f32 %v1229_v52, %v3270_v50  ;;  %v4329_v39 = vld [vmem:[#allocation88_spill] sm:$0xff]  ;;  %v4330_v47 = vld [vmem:[#allocation89_spill] sm:$0xff] }
  0xfe   :  { %4317 = vst [vmem:[#allocation12_spill] sm:$0xff] %v3492_v43  ;;  %4318 = vst [vmem:[#allocation62_spill] sm:$0xff] %v3496_v12  ;;  %v3502_v20 = vmul.f32 %v3486_v8, %v467_v6  ;;  %v4322_v43 = vld [vmem:[#allocation13_spill] sm:$0xff]  ;;  %v3517_v6 = vmul.f32 %v3205_v22, %v635_v35  ;;  %v3525_v19 = vmul.f32 %v3218_v34, %v636_v29  ;;  %v4331_v34 = vld [vmem:[#allocation91_spill] sm:$0xff]  ;;  %vm1463_vm9 = vcmask 64512  }
  0xff   :  { %4319 = vst [vmem:[#allocation7_spill] sm:$0xff] %v3499_v32  ;;  %v3510_v49 = vadd.f32 %v4322_v43, %v4321_v4  ;;  %4323 = vst [vmem:[#allocation42_spill] sm:$0xff] %v3514_v37  ;;  %v3528_v43 = vmul.f32 %v3225_v56, %v637_v27  ;;  %v3534_v22 = vadd.f32 %v3107_v5, %v4329_v39  ;;  %v4332_v56 = vld [vmem:[#allocation92_spill] sm:$0xff]  ;;  %v4333_v27 = vld [vmem:[#allocation57_spill] sm:$0xff] }
 0x100   :  { %4320 = vst [vmem:[#allocation36_spill] sm:$0xff] %v3502_v20  ;;  %4324 = vst [vmem:[#allocation64_spill] sm:$0xff] %v3517_v6  ;;  %v4325_v20 = vld [vmem:[#allocation80_spill] sm:$0xff]  ;;  %v3540_v50 = vadd.f32 %v3110_v58, %v4330_v47  ;;  %v3544_v52 = vadd.f32 %v3123_v23, %v4331_v34  ;;  %v4335_v29 = vld [vmem:[#allocation81_spill] sm:$0xff]  ;;  %vm126_vm12 = vcmp.ge.f32.partialorder %v3409_v54, %v3350_v59 }
 0x101   :  { %v3521_v32 = vadd.f32 %v4326_v25, %v4325_v20  ;;  %4327 = vst [vmem:[#allocation66_spill] sm:$0xff] %v3525_v19  ;;  %4328 = vst [vmem:[#allocation68_spill] sm:$0xff] %v3528_v43  ;;  %v1155_v55 = vmul.f32 %v3364_v3, %v3510_v49  ;;  %v3548_v25 = vadd.f32 %v4333_v27, %v4332_v56  ;;  %v4334_v20 = vld [vmem:[#allocation27_spill] sm:$0xff]  ;;  %v4336_v39 = vld [vmem:[#allocation82_spill] sm:$0xff] }
 0x102   :  { %v827_v5 = vmul.f32 %v788_v16, %v4334_v20  ;;  %v828_v4 = vmul.f32 %v788_v16, %v4335_v29  ;;  %v829_v12 = vmul.f32 %v788_v16, %v4336_v39  ;;  %v4337_v43 = vld [vmem:[#allocation83_spill] sm:$0xff]  ;;  %v4338_v58 = vld [vmem:[#allocation73_spill] sm:$0xff]  ;;  %v4339_v6 = vld [vmem:[#allocation74_spill] sm:$0xff]  ;;  %vm127_vm4 = vcmp.ge.f32.partialorder %v3416_v51, %v3350_v59 }
 0x103   :  { %v1157_v35 = vmul.f32 %v3370_v44, %v3521_v32  ;;  %v1291_v3 = vadd.f32 %v1259_v28, %v1155_v55  ;;  %v830_v19 = vmul.f32 %v788_v16, %v4337_v43  ;;  %v944_v47 = vmul.f32 %v905_v61, %v4338_v58  ;;  %v4343_v55 = vld [vmem:[#allocation77_spill] sm:$0xff]  ;;  %v4345_v16 = vld [vmem:[#allocation78_spill] sm:$0xff] }
 0x104   :  { %v945_v37 = vmul.f32 %v905_v61, %v4339_v6  ;;  %v3557_v23 = vmul.f32 %v827_v5, %v3534_v22  ;;  %v3560_v34 = vmul.f32 %v828_v4, %v3540_v50  ;;  %v3563_v28 = vmul.f32 %v829_v12, %v3544_v52  ;;  %v413_v5 = vpop.permute.xlu0 %412  ;;  %v4349_v12 = vld [vmem:[#allocation75_spill] sm:$0xff] }
 0x105   :  { %v1293_v44 = vadd.f32 %v1261_v2, %v1157_v35  ;;  %1327 = vmatprep.subr.mxu0 %v1291_v3  ;;  %v946_v56 = vmul.f32 %v905_v61, %v4343_v55  ;;  %v3567_v2 = vmul.f32 %v830_v19, %v3548_v25  ;;  %v947_v35 = vmul.f32 %v905_v61, %v4345_v16  ;;  %v4352_v55 = vld [vmem:[#allocation26_spill] sm:$0xff] }
 0x106   :  { %4340 = vst [vmem:[#allocation43_spill] sm:$0xff] %v3557_v23  ;;  %4341 = vst [vmem:[#allocation44_spill] sm:$0xff] %v3560_v34  ;;  %v3571_v27 = vmul.f32 %v944_v47, %v3264_v13  ;;  %v3574_v3 = vmul.f32 %v945_v37, %v3268_v14  ;;  %v1258_v19 = vmul.f32 %v3379_v53, %v3342_v57  ;;  %v583_v13 = vpop.permute.xlu1 %582  ;;  %v4356_v53 = vld [vmem:[#allocation52_spill] sm:$0xff] }
 0x107   :  { %4342 = vst [vmem:[#allocation45_spill] sm:$0xff] %v3563_v28  ;;  %1404 = vmatprep.subr.mxu1 %v1293_v44  ;;  %4344 = vst [vmem:[#allocation24_spill] sm:$0xff] %v3567_v2  ;;  %v3577_v4 = vmul.f32 %v946_v56, %v3274_v21  ;;  %v4350_v28 = vld [vmem:[#allocation25_spill] sm:$0xff]  ;;  %v4351_v44 = vld [vmem:[#allocation79_spill] sm:$0xff]  ;;  %v3590_v47 = vmul.f32 %v947_v35, %v3278_v30  ;;  %v1260_v14 = vmul.f32 %v3396_v62, %v3372_v9 }
 0x108   :  { %4346 = vst [vmem:[#allocation28_spill] sm:$0xff] %v3571_v27  ;;  %4347 = vst [vmem:[#allocation29_spill] sm:$0xff] %v3574_v3  ;;  %v3581_v23 = vadd.f32 %v4350_v28, %v4349_v12  ;;  %v3587_v61 = vadd.f32 %v4352_v55, %v4351_v44  ;;  %v4354_v21 = vld [vmem:[#allocation50_spill] sm:$0xff]  ;;  %v4355_v56 = vld [vmem:[#allocation51_spill] sm:$0xff]  ;;  %v3603_v55 = vmul.f32 %v1086_v1, %v4356_v53 }
 0x109   :  { %4348 = vst [vmem:[#allocation30_spill] sm:$0xff] %v3577_v4  ;;  %4353 = vst [vmem:[#allocation76_spill] sm:$0xff] %v3590_v47  ;;  %v3595_v37 = vmul.f32 %v1086_v1, %v4354_v21  ;;  %v1119_v28 = vmul.f32 %v1086_v1, %v4355_v56  ;;  %v1121_v30 = vmul.f32 %v1086_v1, %v4227_v60  ;;  %v4357_v35 = vld [vmem:[#allocation8_spill] sm:$0xff]  ;;  %v4358_v9 = vld [vmem:[#allocation9_spill] sm:$0xff]  ;;  %v783_v60 = vpop.permute.xlu0 %782 }
 0x10a   :  { %v1154_v12 = vmul.f32 %v3357_v33, %v3581_v23  ;;  %v1156_v57 = vmul.f32 %v3367_v48, %v3587_v61  ;;  %v3607_v44 = vmul.f32 %v1190_v18, %v4357_v35  ;;  %v1223_v62 = vmul.f32 %v1190_v18, %v4358_v9  ;;  %v4359_v21 = vld [vmem:[#allocation10_spill] sm:$0xff]  ;;  %v4360_v56 = vld [vmem:[#allocation11_spill] sm:$0xff]  ;;  %v900_v1 = vpop.permute.xlu1 %899 }
 0x10b   :  { %v3611_v4 = vmul.f32 %v1190_v18, %v4359_v21  ;;  %v1225_v27 = vmul.f32 %v1190_v18, %v4360_v56  ;;  %vm128_vm5 = vcmp.ge.f32.partialorder %v3423_v15, %v3350_v59  ;;  %vm174_vm14 = vcmp.lt.f32.partialorder %v3402_v17, %v3186_v38 }
 0x10c   :  { %v1290_v16 = vadd.f32 %v1258_v19, %v1154_v12  ;;  %v1292_v33 = vadd.f32 %v1260_v14, %v1156_v57  ;;  %vm175_vm11 = vcmp.lt.f32.partialorder %v3409_v54, %v3186_v38  ;;  %vm176_vm15 = vcmp.lt.f32.partialorder %v3416_v51, %v3186_v38  ;;  %vm218_vm2 = vmand %vm125_vm3, %vm174_vm14 }
 0x10d   :  { %vm177_vm1 = vcmp.lt.f32.partialorder %v3423_v15, %v3186_v38  ;;  %v3632_v48 = vsub.f32 %v3402_v17, %v3350_v59  ;;  %vm219_vm0 = vmand %vm126_vm12, %vm175_vm11  ;;  %v1811_v18 = vsel %vm218_vm2, 1.0, %v4150_v46  ;;  %v3637_v19 = vsub.f32 %v3409_v54, %v3350_v59  ;;  %v1081_v3 = vpop.permute.xlu0 %1080 }
 0x10e   :  { %1328 = vmatpush1.msra.mxu0 %v1290_v16  ;;  %1405 = vmatpush1.msra.mxu1 %v1292_v33  ;;  %v3641_v16 = vsub.f32 %v3416_v51, %v3350_v59  ;;  %v3645_v38 = vsub.f32 %v3423_v15, %v3350_v59  ;;  %vm220_vm6 = vmand %vm127_vm4, %vm176_vm15  ;;  %v1812_v14 = vsel %vm219_vm0, 1.0, %v4150_v46  ;;  %v540_v57 = vsub.f32 %v2921_v7, %v3402_v17 }
 0x10f   :  { %v460_v12 = vmul.f32 %v413_v5, %v3632_v48  ;;  %v541_v53 = vsub.f32 %v2921_v7, %v3409_v54  ;;  %vm221_vm7 = vmand %vm128_vm5, %vm177_vm1  ;;  %v1813_v35 = vsel %vm220_vm6, 1.0, %v4150_v46  ;;  %v461_v9 = vmul.f32 %v413_v5, %v3637_v19 }
 0x110   :  { %4361 = vst [vmem:[#allocation13_spill] sm:$0xff] %v3645_v38  ;;  %v462_v21 = vmul.f32 %v413_v5, %v3641_v16  ;;  %v463_v56 = vmul.f32 %v413_v5, %v3645_v38  ;;  %v1814_v33 = vsel %vm221_vm7, 1.0, %v4150_v46  ;;  %v542_v17 = vsub.f32 %v2921_v7, %v3416_v51 }
 0x111   :  { %v3664_v6 = vmul.f32 %v1811_v18, %v460_v12  ;;  %v543_v54 = vsub.f32 %v2921_v7, %v3423_v15  ;;  %v3670_v59 = vmul.f32 %v1812_v14, %v461_v9  ;;  %v630_v2 = vmul.f32 %v583_v13, %v540_v57  ;;  %v1185_v12 = vpop.permute.xlu1 %1184  ;;  %v4362_v14 = vld [vmem:[#allocation53_spill] sm:$0xff] }
 0x112   :  { %v3672_v58 = vmul.f32 %v1813_v35, %v462_v21  ;;  %v3674_v47 = vmul.f32 %v1814_v33, %v463_v56  ;;  %v631_v34 = vmul.f32 %v583_v13, %v541_v53  ;;  %v632_v5 = vmul.f32 %v583_v13, %v542_v17  ;;  %v4363_v35 = vld [vmem:[#allocation95_spill] sm:$0xff]  ;;  %v4369_v21 = vld [vmem:[#allocation98_spill] sm:$0xff] }
 0x113   :  { %v633_v38 = vmul.f32 %v583_v13, %v543_v54  ;;  %v3678_v18 = vadd.f32 %v3154_v10, %v3140_v45  ;;  %v3681_v46 = vmul.f32 %v3444_v26, %v630_v2  ;;  %v1255_v7 = vmul.f32 %v1223_v62, %v3510_v49  ;;  %v4364_v49 = vld [vmem:[#allocation16_spill] sm:$0xff]  ;;  %v4368_v62 = vld [vmem:[#allocation97_spill] sm:$0xff]  ;;  %v4370_v56 = vld [vmem:[#allocation99_spill] sm:$0xff] }
 0x114   :  { %v3686_v9 = vadd.f32 %v4363_v35, %v4362_v14  ;;  %v1257_v57 = vmul.f32 %v1225_v27, %v3521_v32  ;;  %v3690_v53 = vmul.f32 %v3462_v0, %v631_v34  ;;  %v3693_v17 = vmul.f32 %v3477_v63, %v632_v5  ;;  %v4365_v2 = vld [vmem:[#allocation32_spill] sm:$0xff]  ;;  %v778_v14 = vpop.permute.xlu0 %777 }
 0x115   :  { %v3696_v10 = vmul.f32 %v3486_v8, %v633_v38  ;;  %v1151_v45 = vmul.f32 %v1119_v28, %v3678_v18  ;;  %v718_v26 = vadd.f32 %v3326_v11, %v4364_v49  ;;  %v719_v13 = vadd.f32 %v3329_v36, %v4365_v2  ;;  %v4366_v32 = vld [vmem:[#allocation20_spill] sm:$0xff] }
 0x116   :  { %v1153_v54 = vmul.f32 %v1121_v30, %v3686_v9  ;;  %v720_v0 = vadd.f32 %v3334_v31, %v4366_v32  ;;  %v721_v63 = vadd.f32 %v3337_v42, %v3238_v24  ;;  %v4367_v27 = vld [vmem:[#allocation96_spill] sm:$0xff]  ;;  %v824_v38 = vmul.f32 %v783_v60, %v4368_v62  ;;  %v4375_v24 = vld [vmem:[#allocation87_spill] sm:$0xff] }
 0x117   :  { %v1287_v34 = vadd.f32 %v1255_v7, %v1151_v45  ;;  %v823_v8 = vmul.f32 %v783_v60, %v4367_v27  ;;  %v825_v30 = vmul.f32 %v783_v60, %v4369_v21  ;;  %v826_v33 = vmul.f32 %v783_v60, %v4370_v56  ;;  %v4371_v11 = vld [vmem:[#allocation84_spill] sm:$0xff]  ;;  %v4374_v7 = vld [vmem:[#allocation86_spill] sm:$0xff]  ;;  %v895_v45 = vpop.permute.xlu1 %894 }
 0x118   :  { %v1289_v28 = vadd.f32 %v1257_v57, %v1153_v54  ;;  %v940_v5 = vmul.f32 %v900_v1, %v4371_v11  ;;  %v3715_v31 = vmul.f32 %v824_v38, %v719_v13  ;;  %v941_v35 = vmul.f32 %v900_v1, %v4374_v7  ;;  %v4378_v54 = vld [vmem:[#allocation90_spill] sm:$0xff]  ;;  %v4383_v38 = vld [vmem:[#allocation93_spill] sm:$0xff] }
 0x119   :  { %1329 = vmatprep.subr.mxu0 %v1287_v34  ;;  %v3713_v36 = vmul.f32 %v823_v8, %v718_v26  ;;  %v942_v42 = vmul.f32 %v900_v1, %v4375_v24  ;;  %v3719_v49 = vmul.f32 %v825_v30, %v720_v0  ;;  %v3721_v57 = vmul.f32 %v826_v33, %v721_v63  ;;  %v4382_v8 = vld [vmem:[#allocation58_spill] sm:$0xff]  ;;  %v4385_v33 = vld [vmem:[#allocation60_spill] sm:$0xff] }
 0x11a   :  { %4373 = vst [vmem:[#allocation14_spill] sm:$0xff] %v3715_v31  ;;  %1406 = vmatprep.subr.mxu1 %v1289_v28  ;;  %v943_v60 = vmul.f32 %v900_v1, %v4378_v54  ;;  %v3725_v2 = vmul.f32 %v940_v5, %v3534_v22  ;;  %v3728_v32 = vmul.f32 %v941_v35, %v3540_v50  ;;  %v4386_v1 = vld [vmem:[#allocation94_spill] sm:$0xff]  ;;  %v4387_v35 = vld [vmem:[#allocation71_spill] sm:$0xff] }
 0x11b   :  { %4372 = vst [vmem:[#allocation80_spill] sm:$0xff] %v3713_v36  ;;  %4376 = vst [vmem:[#allocation88_spill] sm:$0xff] %v3719_v49  ;;  %v3731_v34 = vmul.f32 %v942_v42, %v3544_v52  ;;  %v1024_v51 = vadd.f32 %v4383_v38, %v4382_v8  ;;  %v1254_v28 = vmul.f32 %v3607_v44, %v3581_v23  ;;  %v4388_v8 = vld [vmem:[#allocation72_spill] sm:$0xff]  ;;  %v4389_v44 = vld [vmem:[#allocation46_spill] sm:$0xff] }
 0x11c   :  { %4377 = vst [vmem:[#allocation89_spill] sm:$0xff] %v3721_v57  ;;  %4379 = vst [vmem:[#allocation91_spill] sm:$0xff] %v3725_v2  ;;  %v3738_v30 = vmul.f32 %v943_v60, %v3548_v25  ;;  %v1026_v15 = vadd.f32 %v4386_v1, %v4385_v33  ;;  %v1256_v22 = vmul.f32 %v3611_v4, %v3587_v61  ;;  %v4390_v38 = vld [vmem:[#allocation47_spill] sm:$0xff]  ;;  %v4391_v1 = vld [vmem:[#allocation48_spill] sm:$0xff]  ;;  %v1076_v4 = vpop.permute.xlu0 %1075 }
 0x11d   :  { %4380 = vst [vmem:[#allocation92_spill] sm:$0xff] %v3728_v32  ;;  %4381 = vst [vmem:[#allocation57_spill] sm:$0xff] %v3731_v34  ;;  %v1114_v50 = vmul.f32 %v1081_v3, %v4253_v41  ;;  %v1150_v52 = vmul.f32 %v3595_v37, %v1024_v51  ;;  %v1115_v5 = vmul.f32 %v1081_v3, %v4254_v40  ;;  %v4392_v41 = vld [vmem:[#allocation49_spill] sm:$0xff]  ;;  %v4393_v37 = vld [vmem:[#allocation40_spill] sm:$0xff] }
 0x11e   :  { %4384 = vst [vmem:[#allocation27_spill] sm:$0xff] %v3738_v30  ;;  %v3748_v42 = vmul.f32 %v1081_v3, %v4387_v35  ;;  %v1117_v23 = vmul.f32 %v1081_v3, %v4388_v8  ;;  %v1152_v25 = vmul.f32 %v3603_v55, %v1026_v15  ;;  %v1218_v60 = vmul.f32 %v1185_v12, %v4389_v44  ;;  %v4394_v2 = vld [vmem:[#allocation42_spill] sm:$0xff]  ;;  %v4395_v35 = vld [vmem:[#allocation12_spill] sm:$0xff]  ;;  %v1180_v3 = vpop.permute.xlu1 %1179  ;;  %v4397_v8 = vld [vmem:[#allocation7_spill] sm:$0xff] }
 0x11f   :  { %v1219_v33 = vmul.f32 %v1185_v12, %v4390_v38  ;;  %v1220_v34 = vmul.f32 %v1185_v12, %v4391_v1  ;;  %v1286_v61 = vadd.f32 %v1254_v28, %v1150_v52  ;;  %v1221_v49 = vmul.f32 %v1185_v12, %v4392_v41  ;;  %v4396_v36 = vld [vmem:[#allocation64_spill] sm:$0xff]  ;;  %v4398_v44 = vld [vmem:[#allocation66_spill] sm:$0xff]  ;;  %v4401_v28 = vld [vmem:[#allocation63_spill] sm:$0xff] }
 0x120   :  { %v3758_v40 = vadd.f32 %v4394_v2, %v4393_v37  ;;  %v3762_v30 = vadd.f32 %v4396_v36, %v4395_v35  ;;  %v1288_v55 = vadd.f32 %v1256_v22, %v1152_v25  ;;  %v3766_v57 = vadd.f32 %v4398_v44, %v4397_v8  ;;  %v4399_v38 = vld [vmem:[#allocation36_spill] sm:$0xff]  ;;  %v4402_v52 = vld [vmem:[#allocation65_spill] sm:$0xff]  ;;  %v4403_v41 = vld [vmem:[#allocation67_spill] sm:$0xff] }
 0x121   :  { %v4400_v1 = vld [vmem:[#allocation68_spill] sm:$0xff]  ;;  %v819_v12 = vmul.f32 %v778_v14, %v4401_v28  ;;  %1330 = vmatpush1.msra.mxu0 %v1286_v61  ;;  %v820_v2 = vmul.f32 %v778_v14, %v4402_v52  ;;  %v821_v37 = vmul.f32 %v778_v14, %v4403_v41  ;;  %v4404_v31 = vld [vmem:[#allocation35_spill] sm:$0xff]  ;;  %v4407_v25 = vld [vmem:[#allocation41_spill] sm:$0xff] }
 0x122   :  { %v3770_v32 = vadd.f32 %v4400_v1, %v4399_v38  ;;  %v822_v36 = vmul.f32 %v778_v14, %v4404_v31  ;;  %v4405_v35 = vld [vmem:[#allocation39_spill] sm:$0xff]  ;;  %1407 = vmatpush1.msra.mxu1 %v1288_v55  ;;  %v937_v8 = vmul.f32 %v895_v45, %v4407_v25  ;;  %v4408_v44 = vld [vmem:[#allocation70_spill] sm:$0xff]  ;;  %v4409_v1 = vld [vmem:[#allocation37_spill] sm:$0xff] }
 0x123   :  { %v936_v54 = vmul.f32 %v895_v45, %v4405_v35  ;;  %v3778_v22 = vmul.f32 %v819_v12, %v3758_v40  ;;  %v938_v38 = vmul.f32 %v895_v45, %v4408_v44  ;;  %v939_v24 = vmul.f32 %v895_v45, %v4409_v1  ;;  %v4417_v44 = vld [vmem:[#allocation34_spill] sm:$0xff]  ;;  %v4418_v25 = vld [vmem:[#allocation31_spill] sm:$0xff]  ;;  %v773_v1 = vpop.permute.xlu0 %772 }
 0x124   :  { %v3784_v61 = vmul.f32 %v820_v2, %v3762_v30  ;;  %v3787_v7 = vmul.f32 %v821_v37, %v3766_v57  ;;  %v3790_v14 = vmul.f32 %v822_v36, %v3770_v32  ;;  %v3794_v55 = vmul.f32 %v937_v8, %v719_v13  ;;  %v4420_v37 = vld [vmem:[#allocation38_spill] sm:$0xff]  ;;  %v890_v13 = vpop.permute.xlu1 %889 }
 0x125   :  { %4406 = vst [vmem:[#allocation81_spill] sm:$0xff] %v3778_v22  ;;  %v3792_v35 = vmul.f32 %v936_v54, %v718_v26  ;;  %v3796_v12 = vmul.f32 %v938_v38, %v720_v0  ;;  %v3798_v22 = vmul.f32 %v939_v24, %v721_v63  ;;  %v1021_v45 = vadd.f32 %v4418_v25, %v4417_v44  ;;  %v4421_v8 = vld [vmem:[#allocation54_spill] sm:$0xff]  ;;  %v4423_v38 = vld [vmem:[#allocation56_spill] sm:$0xff] }
 0x126   :  { %4410 = vst [vmem:[#allocation82_spill] sm:$0xff] %v3784_v61  ;;  %4411 = vst [vmem:[#allocation83_spill] sm:$0xff] %v3787_v7  ;;  %v1251_v2 = vmul.f32 %v1219_v33, %v3678_v18  ;;  %v4419_v61 = vld [vmem:[#allocation69_spill] sm:$0xff]  ;;  %v1253_v36 = vmul.f32 %v1221_v49, %v3686_v9  ;;  %v3807_v26 = vmul.f32 %v1076_v4, %v4334_v20  ;;  %v4422_v33 = vld [vmem:[#allocation55_spill] sm:$0xff] }
 0x127   :  { %4412 = vst [vmem:[#allocation75_spill] sm:$0xff] %v3790_v14  ;;  %4413 = vst [vmem:[#allocation25_spill] sm:$0xff] %v3792_v35  ;;  %v1023_v7 = vadd.f32 %v4420_v37, %v4419_v61  ;;  %v1147_v54 = vmul.f32 %v1115_v5, %v1021_v45  ;;  %v1111_v0 = vmul.f32 %v1076_v4, %v4335_v29  ;;  %v4424_v49 = vld [vmem:[#allocation59_spill] sm:$0xff]  ;;  %v4425_v37 = vld [vmem:[#allocation18_spill] sm:$0xff] }
 0x128   :  { %4414 = vst [vmem:[#allocation79_spill] sm:$0xff] %v3794_v55  ;;  %4415 = vst [vmem:[#allocation26_spill] sm:$0xff] %v3796_v12  ;;  %v3811_v63 = vmul.f32 %v1076_v4, %v4336_v39  ;;  %v1113_v24 = vmul.f32 %v1076_v4, %v4337_v43  ;;  %v1214_v18 = vmul.f32 %v1180_v3, %v4421_v8  ;;  %v4426_v12 = vld [vmem:[#allocation15_spill] sm:$0xff] }
 0x129   :  { %4416 = vst [vmem:[#allocation50_spill] sm:$0xff] %v3798_v22  ;;  %v1149_v25 = vmul.f32 %v1117_v23, %v1023_v7  ;;  %v1215_v44 = vmul.f32 %v1180_v3, %v4422_v33  ;;  %v1216_v61 = vmul.f32 %v1180_v3, %v4423_v38  ;;  %v1283_v9 = vadd.f32 %v1251_v2, %v1147_v54  ;;  %v4427_v22 = vld [vmem:[#allocation22_spill] sm:$0xff]  ;;  %v4428_v39 = vld [vmem:[#allocation19_spill] sm:$0xff] }
 0x12a   :  { %v1217_v20 = vmul.f32 %v1180_v3, %v4424_v49  ;;  %v1020_v5 = vadd.f32 %v4426_v12, %v4425_v37  ;;  %v1250_v35 = vmul.f32 %v1218_v60, %v1024_v51  ;;  %v1022_v14 = vadd.f32 %v4428_v39, %v4427_v22  ;;  %v1071_v51 = vpop.permute.xlu0 %1070  ;;  %v4429_v22 = vld [vmem:[#allocation13_spill] sm:$0xff]  ;;  %v4433_v33 = vld [vmem:[#allocation62_spill] sm:$0xff]  ;;  %v4437_v39 = vld [vmem:[#allocation76_spill] sm:$0xff] }
 0x12b   :  { %v1285_v29 = vadd.f32 %v1253_v36, %v1149_v25  ;;  %v1252_v55 = vmul.f32 %v1220_v34, %v1026_v15  ;;  %v710_v43 = vadd.f32 %v3681_v46, %v3664_v6  ;;  %1331 = vmatprep.subr.mxu0 %v1283_v9  ;;  %v711_v4 = vadd.f32 %v3690_v53, %v3670_v59  ;;  %v1175_v6 = vpop.permute.xlu1 %1174  ;;  %v4430_v53 = vld [vmem:[#allocation17_spill] sm:$0xff] }
 0x12c   :  { %v1146_v23 = vmul.f32 %v1114_v50, %v1020_v5  ;;  %v712_v3 = vadd.f32 %v3693_v17, %v3672_v58  ;;  %v713_v12 = vadd.f32 %v3696_v10, %v3674_v47  ;;  %v1148_v60 = vmul.f32 %v3748_v42, %v1022_v14  ;;  %v4431_v58 = vld [vmem:[#allocation33_spill] sm:$0xff] }
 0x12d   :  { %1408 = vmatprep.subr.mxu1 %v1285_v29  ;;  %v815_v15 = vmul.f32 %v773_v1, %v3632_v48  ;;  %v816_v34 = vmul.f32 %v773_v1, %v3637_v19  ;;  %v817_v46 = vmul.f32 %v773_v1, %v3641_v16  ;;  %v818_v59 = vmul.f32 %v773_v1, %v4429_v22  ;;  %v4432_v25 = vld [vmem:[#allocation21_spill] sm:$0xff]  ;;  %v4436_v29 = vld [vmem:[#allocation24_spill] sm:$0xff] }
 0x12e   :  { %v1282_v50 = vadd.f32 %v1250_v35, %v1146_v23  ;;  %v932_v2 = vmul.f32 %v890_v13, %v4430_v53  ;;  %v933_v17 = vmul.f32 %v890_v13, %v4431_v58  ;;  %v1284_v36 = vadd.f32 %v1252_v55, %v1148_v60  ;;  %v4434_v55 = vld [vmem:[#allocation44_spill] sm:$0xff]  ;;  %v4435_v9 = vld [vmem:[#allocation29_spill] sm:$0xff] }
 0x12f   :  { %v3837_v47 = vmul.f32 %v815_v15, %v710_v43  ;;  %v3839_v10 = vmul.f32 %v816_v34, %v711_v4  ;;  %v3841_v42 = vmul.f32 %v817_v46, %v712_v3  ;;  %v3843_v54 = vmul.f32 %v818_v59, %v713_v12  ;;  %v1066_v3 = vpop.permute.xlu0 %1065  ;;  %v4438_v34 = vld [vmem:[#allocation73_spill] sm:$0xff] }
 0x130   :  { %1332 = vmatpush1.msra.mxu0 %v1282_v50  ;;  %v934_v8 = vmul.f32 %v890_v13, %v4432_v25  ;;  %v935_v35 = vmul.f32 %v890_v13, %v4433_v33  ;;  %v3848_v1 = vmul.f32 %v932_v2, %v3758_v40  ;;  %1409 = vmatpush1.msra.mxu1 %v1284_v36  ;;  %v4440_v59 = vld [vmem:[#allocation77_spill] sm:$0xff]  ;;  %v4442_v2 = vld [vmem:[#allocation43_spill] sm:$0xff] }
 0x131   :  { %v3851_v38 = vmul.f32 %v933_v17, %v3762_v30  ;;  %v1017_v49 = vadd.f32 %v4435_v9, %v4434_v55  ;;  %v1247_v37 = vmul.f32 %v1215_v44, %v1021_v45  ;;  %v1019_v43 = vadd.f32 %v4437_v39, %v4436_v29  ;;  %v1170_v45 = vpop.permute.xlu1 %1169  ;;  %v4445_v17 = vld [vmem:[#allocation30_spill] sm:$0xff] }
 0x132   :  { %v3858_v23 = vmul.f32 %v934_v8, %v3766_v57  ;;  %v3861_v4 = vmul.f32 %v935_v35, %v3770_v32  ;;  %v1249_v13 = vmul.f32 %v1217_v20, %v1023_v7  ;;  %v1106_v40 = vmul.f32 %v1071_v51, %v4367_v27  ;;  %v4439_v57 = vld [vmem:[#allocation74_spill] sm:$0xff] }
 0x133   :  { %v1143_v12 = vmul.f32 %v1111_v0, %v1017_v49  ;;  %v1145_v30 = vmul.f32 %v1113_v24, %v1019_v43  ;;  %v1107_v60 = vmul.f32 %v1071_v51, %v4368_v62  ;;  %v1108_v15 = vmul.f32 %v1071_v51, %v4369_v21  ;;  %v4441_v20 = vld [vmem:[#allocation78_spill] sm:$0xff]  ;;  %v4443_v0 = vld [vmem:[#allocation28_spill] sm:$0xff]  ;;  %v4444_v62 = vld [vmem:[#allocation45_spill] sm:$0xff]  ;;  %v1061_v55 = vpop.permute.xlu0 %1060 }
 0x134   :  { %v1109_v44 = vmul.f32 %v1071_v51, %v4370_v56  ;;  %v1210_v46 = vmul.f32 %v1175_v6, %v4438_v34  ;;  %v1211_v50 = vmul.f32 %v1175_v6, %v4439_v57  ;;  %v1212_v32 = vmul.f32 %v1175_v6, %v4440_v59  ;;  %v4448_v9 = vld [vmem:[#allocation90_spill] sm:$0xff] }
 0x135   :  { %v1279_v53 = vadd.f32 %v1247_v37, %v1143_v12  ;;  %v1281_v7 = vadd.f32 %v1249_v13, %v1145_v30  ;;  %v1213_v27 = vmul.f32 %v1175_v6, %v4441_v20  ;;  %v1016_v24 = vadd.f32 %v4443_v0, %v4442_v2  ;;  %v4449_v29 = vld [vmem:[#allocation14_spill] sm:$0xff]  ;;  %v4451_v12 = vld [vmem:[#allocation89_spill] sm:$0xff] }
 0x136   :  { %v1246_v58 = vmul.f32 %v1214_v18, %v1020_v5  ;;  %v1018_v21 = vadd.f32 %v4445_v17, %v4444_v62  ;;  %v1248_v36 = vmul.f32 %v1216_v61, %v1022_v14  ;;  %v1102_v56 = vmul.f32 %v1066_v3, %v4401_v28  ;;  %v4446_v5 = vld [vmem:[#allocation86_spill] sm:$0xff]  ;;  %v4447_v61 = vld [vmem:[#allocation87_spill] sm:$0xff]  ;;  %v4454_v20 = vld [vmem:[#allocation41_spill] sm:$0xff] }
 0x137   :  { %1333 = vmatprep.subr.mxu0 %v1279_v53  ;;  %1410 = vmatprep.subr.mxu1 %v1281_v7  ;;  %v1142_v51 = vmul.f32 %v3807_v26, %v1016_v24  ;;  %v1103_v25 = vmul.f32 %v1066_v3, %v4402_v52  ;;  %v1104_v8 = vmul.f32 %v1066_v3, %v4403_v41  ;;  %v4450_v26 = vld [vmem:[#allocation92_spill] sm:$0xff]  ;;  %v1165_v52 = vpop.permute.xlu1 %1164  ;;  %v4453_v53 = vld [vmem:[#allocation39_spill] sm:$0xff]  ;;  %v4455_v2 = vld [vmem:[#allocation70_spill] sm:$0xff] }
 0x138   :  { %v1144_v6 = vmul.f32 %v3811_v63, %v1018_v21  ;;  %v1105_v33 = vmul.f32 %v1066_v3, %v4404_v31  ;;  %v1206_v18 = vmul.f32 %v1170_v45, %v4371_v11  ;;  %v1207_v35 = vmul.f32 %v1170_v45, %v4446_v5  ;;  %v4452_v63 = vld [vmem:[#allocation27_spill] sm:$0xff]  ;;  %v4459_v17 = vld [vmem:[#allocation88_spill] sm:$0xff] }
 0x139   :  { %v1278_v14 = vadd.f32 %v1246_v58, %v1142_v51  ;;  %v1208_v28 = vmul.f32 %v1170_v45, %v4447_v61  ;;  %v1209_v37 = vmul.f32 %v1170_v45, %v4448_v9  ;;  %v1013_v39 = vadd.f32 %v4450_v26, %v4449_v29  ;;  %v4458_v58 = vld [vmem:[#allocation91_spill] sm:$0xff]  ;;  %v4461_v51 = vld [vmem:[#allocation82_spill] sm:$0xff] }
 0x13a   :  { %v1280_v13 = vadd.f32 %v1248_v36, %v1144_v6  ;;  %v1243_v41 = vmul.f32 %v1211_v50, %v1017_v49  ;;  %v1015_v30 = vadd.f32 %v4452_v63, %v4451_v12  ;;  %v1245_v31 = vmul.f32 %v1213_v27, %v1019_v43  ;;  %v4456_v43 = vld [vmem:[#allocation37_spill] sm:$0xff]  ;;  %v4462_v6 = vld [vmem:[#allocation79_spill] sm:$0xff]  ;;  %v4464_v61 = vld [vmem:[#allocation50_spill] sm:$0xff] }
 0x13b   :  { %1334 = vmatpush1.msra.mxu0 %v1278_v14  ;;  %v1139_v11 = vmul.f32 %v1107_v60, %v1013_v39  ;;  %v1098_v3 = vmul.f32 %v1061_v55, %v3632_v48  ;;  %v1099_v34 = vmul.f32 %v1061_v55, %v3637_v19  ;;  %v1100_v57 = vmul.f32 %v1061_v55, %v3641_v16  ;;  %v4457_v60 = vld [vmem:[#allocation80_spill] sm:$0xff]  ;;  %v4460_v16 = vld [vmem:[#allocation57_spill] sm:$0xff]  ;;  %v4463_v14 = vld [vmem:[#allocation75_spill] sm:$0xff] }
 0x13c   :  { %1411 = vmatpush1.msra.mxu1 %v1280_v13  ;;  %v1141_v45 = vmul.f32 %v1109_v44, %v1015_v30  ;;  %v1101_v59 = vmul.f32 %v1061_v55, %v4429_v22  ;;  %v1202_v7 = vmul.f32 %v1165_v52, %v4453_v53  ;;  %v1203_v49 = vmul.f32 %v1165_v52, %v4454_v20  ;;  %v4466_v13 = vld [vmem:[#allocation25_spill] sm:$0xff] }
 0x13d   :  { %v1275_v50 = vadd.f32 %v1243_v41, %v1139_v11  ;;  %v1204_v0 = vmul.f32 %v1165_v52, %v4455_v2  ;;  %v1205_v27 = vmul.f32 %v1165_v52, %v4456_v43  ;;  %v1012_v48 = vadd.f32 %v4458_v58, %v4457_v60  ;;  %v4465_v52 = vld [vmem:[#allocation81_spill] sm:$0xff]  ;;  %v4471_v60 = vld [vmem:[#allocation23_spill] sm:$0xff] }
 0x13e   :  { %v1277_v62 = vadd.f32 %v1245_v31, %v1141_v45  ;;  %v1242_v19 = vmul.f32 %v1210_v46, %v1016_v24  ;;  %v1014_v36 = vadd.f32 %v4460_v16, %v4459_v17  ;;  %v1244_v44 = vmul.f32 %v1212_v32, %v1018_v21  ;;  %v4467_v32 = vld [vmem:[#allocation83_spill] sm:$0xff]  ;;  %v4468_v21 = vld [vmem:[#allocation26_spill] sm:$0xff] }
 0x13f   :  { %1335 = vmatprep.subr.mxu0 %v1275_v50  ;;  %v1138_v22 = vmul.f32 %v1106_v40, %v1012_v48  ;;  %v1009_v5 = vadd.f32 %v4462_v6, %v4461_v51  ;;  %v1239_v55 = vmul.f32 %v1207_v35, %v1013_v39  ;;  %v1011_v9 = vadd.f32 %v4464_v61, %v4463_v14  ;;  %v1298_v61 = vld [vmem:[%s3983_s4] sm:$0xff] }
 0x140   :  { %1412 = vmatprep.subr.mxu1 %v1277_v62  ;;  %v1140_v29 = vmul.f32 %v1108_v15, %v1014_v36  ;;  %v1241_v26 = vmul.f32 %v1209_v37, %v1015_v30  ;;  %v1008_v41 = vadd.f32 %v4466_v13, %v4465_v52  ;;  %v1238_v46 = vmul.f32 %v1206_v18, %v1012_v48 }
 0x141   :  { %v1274_v24 = vadd.f32 %v1242_v19, %v1138_v22  ;;  %v1135_v12 = vmul.f32 %v1103_v25, %v1009_v5  ;;  %v1137_v63 = vmul.f32 %v1105_v33, %v1011_v9  ;;  %v1010_v40 = vadd.f32 %v4468_v21, %v4467_v32 }
 0x142   :  { %v1276_v31 = vadd.f32 %v1244_v44, %v1140_v29  ;;  %v1134_v11 = vmul.f32 %v1102_v56, %v1008_v41  ;;  %v1240_v45 = vmul.f32 %v1208_v28, %v1014_v36  ;;  %v1005_v35 = vadd.f32 %v3851_v38, %v3839_v10  ;;  %v4469_v10 = vld [vmem:[#allocation61_spill] sm:$0xff]  ;;  %v1299_v29 = vld [vmem:[%s3983_s4 + $0x8] sm:$0xff] }
 0x143   :  { %1336 = vmatpush1.msra.mxu0 %v1274_v24  ;;  %v1271_v39 = vadd.f32 %v1239_v55, %v1135_v12  ;;  %v1273_v15 = vadd.f32 %v1241_v26, %v1137_v63  ;;  %v1136_v37 = vmul.f32 %v1104_v8, %v1010_v40  ;;  %v1235_v30 = vmul.f32 %v1203_v49, %v1009_v5 }
 0x144   :  { %1413 = vmatpush1.msra.mxu1 %v1276_v31  ;;  %v1270_v53 = vadd.f32 %v1238_v46, %v1134_v11  ;;  %v1131_v18 = vmul.f32 %v1099_v34, %v1005_v35  ;;  %v1007_v25 = vadd.f32 %v3861_v4, %v3843_v54  ;;  %v1237_v33 = vmul.f32 %v1205_v27, %v1011_v9  ;;  %v4470_v54 = vld [vmem:[#allocation85_spill] sm:$0xff] }
 0x145   :  { %1337 = vmatprep.subr.mxu0 %v1271_v39  ;;  %1414 = vmatprep.subr.mxu1 %v1273_v15  ;;  %v1272_v20 = vadd.f32 %v1240_v45, %v1136_v37  ;;  %v1004_v56 = vadd.f32 %v3848_v1, %v3837_v47  ;;  %v1234_v28 = vmul.f32 %v1202_v7, %v1008_v41  ;;  %v55_v38 = vmul.f32 0.70710677, %v4469_v10  ;;  %v1300_v7 = vld [vmem:[%s3984_s5] sm:$0xff] }
 0x146   :  { %1338 = vmatpush1.msra.mxu0 %v1270_v53  ;;  %v1267_v50 = vadd.f32 %v1235_v30, %v1131_v18  ;;  %v1133_v8 = vmul.f32 %v1101_v59, %v1007_v25  ;;  %v1006_v49 = vadd.f32 %v3858_v23, %v3841_v42  ;;  %v1236_v34 = vmul.f32 %v1204_v0, %v1010_v40  ;;  %v4472_v59 = vld [vmem:[#allocation6_spill] sm:$0xff] }
 0x147   :  { %1415 = vmatpush1.msra.mxu1 %v1272_v20  ;;  %v1130_v2 = vmul.f32 %v1098_v3, %v1004_v56  ;;  %1904 = verf.f32 %v55_v38  ;;  %v57_v4 = vmul.f32 0.70710677, %v4470_v54  ;;  %v54_v47 = vmul.f32 0.70710677, %v4471_v60 }
 0x148   :  { %1339 = vmatprep.subr.mxu0 %v1267_v50  ;;  %v1269_v43 = vadd.f32 %v1237_v33, %v1133_v8  ;;  %v1132_v27 = vmul.f32 %v1100_v57, %v1006_v49  ;;  %v56_v42 = vmul.f32 0.70710677, %v4472_v59  ;;  %v4473_v3 = vmov 0.0   ;;  %v1301_v57 = vld [vmem:[%s3984_s5 + $0x8] sm:$0xff] }
 0x149   :  { %v1266_v1 = vadd.f32 %v1234_v28, %v1130_v2  ;;  %1906 = verf.f32 %v57_v4  ;;  %v51_v0 = vmul.f32 0.5, %v4469_v10  ;;  %v53_v62 = vmul.f32 0.5, %v4470_v54 }
 0x14a   :  { %1416 = vmatprep.subr.mxu1 %v1269_v43  ;;  %v1268_v23 = vadd.f32 %v1236_v34, %v1132_v27  ;;  %1908 = verf.f32 %v54_v47  ;;  %v50_v17 = vmul.f32 0.5, %v4471_v60  ;;  %v52_v22 = vmul.f32 0.5, %v4472_v59 }
 0x14b   :  { %1340 = vmatpush1.msra.mxu0 %v1266_v1  ;;  %1910 = verf.f32 %v56_v42 }
 0x14c   :  { %1417 = vmatpush1.msra.mxu1 %v1268_v23  ;;  %1889 = vmatmul.mubr.msk.f32.vlgmr.msra.gmra.mxu0 %vm1302_vm8, %v1300_v7 }
 0x14d   :  { %1891 = vmatmul.mubr.msk.f32.vlgmr.msra.gmra.mxu1 %vm1302_vm8, %v1300_v7  ;;  %1379 = vmatprep.mubr.f32.mxu0 %v4473_v3 }
 0x14e   :  { %1456 = vmatprep.mubr.f32.mxu1 %v4473_v3 }
 0x150   :  { %1890 = vmatmul.mubr.msk.f32.gmra.mxu0 %vm1302_vm8, %v1301_v57 }
 0x151   :  { %1892 = vmatmul.mubr.msk.f32.gmra.mxu1 %vm1302_vm8, %v1301_v57  ;;  %1534 = vmatprep.mubr.f32.mxu0 %v4473_v3 }
 0x152   :  { %1611 = vmatprep.mubr.f32.mxu1 %v4473_v3 }
 0x154   :  { %v1905_v58 = vpop.eup %1904 }
 0x155   :  { %v63_v48 = vadd.f32 1.0, %v1905_v58 }
 0x156   :  { %v1907_v19 = vpop.eup %1906 }
 0x157   :  { %v1909_v16 = vpop.eup %1908  ;;  %v67_v36 = vmul.f32 %v63_v48, %v51_v0  ;;  %v65_v44 = vadd.f32 1.0, %v1907_v19 }
 0x158   :  { %v1911_v51 = vpop.eup %1910  ;;  %v62_v6 = vadd.f32 1.0, %v1909_v16 }
 0x159   :  { %1500 = vmatprep.subr.mxu0 %v67_v36  ;;  %v69_v5 = vmul.f32 %v65_v44, %v53_v62  ;;  %v64_v55 = vadd.f32 1.0, %v1911_v51 }
 0x15a   :  { %v66_v14 = vmul.f32 %v62_v6, %v50_v17 }
 0x15b   :  { %1577 = vmatprep.subr.mxu1 %v69_v5  ;;  %v68_v9 = vmul.f32 %v64_v55, %v52_v22 }
 0x15c   :  { %1501 = vmatpush1.msra.mxu0 %v66_v14 }
 0x15d   :  { %1578 = vmatpush1.msra.mxu1 %v68_v9  ;;  %1893 = vmatmul.mubr.msk.f32.vlgmr.msra.gmra.mxu0 %vm1463_vm9, %v1298_v61 }
 0x15e   :  { %1895 = vmatmul.mubr.msk.f32.vlgmr.msra.gmra.mxu1 %vm1463_vm9, %v1298_v61  ;;  %1540 = vmatprep.mubr.f32.mxu0 %v4473_v3 }
 0x15f   :  { %1617 = vmatprep.mubr.f32.mxu1 %v4473_v3 }
 0x161   :  { %1894 = vmatmul.mubr.msk.f32.gmra.mxu0 %vm1463_vm9, %v1299_v29 }
 0x162   :  { %1896 = vmatmul.mubr.msk.f32.gmra.mxu1 %vm1463_vm9, %v1299_v29 }
 0x20c   :  { %v1375_v26 = vpop.f32.mrf.mxu0 }
 0x20d   :  { %v1452_v52 = vpop.f32.mrf.mxu1 }
 0x20e   :  { %v1377_v13 = vpop.f32.mrf.mxu0 }
 0x20f   :  { %v1454_v41 = vpop.f32.mrf.mxu1 }
 0x210   :  { %v1381_v46 = vpop.f32.mrf.mxu0 }
 0x211   :  { %v1458_v24 = vpop.f32.mrf.mxu1 }
 0x212   :  { %v1383_v12 = vpop.f32.mrf.mxu0 }
 0x213   :  { %v1460_v63 = vpop.f32.mrf.mxu1 }
 0x21d   :  { %v1536_v32 = vpop.f32.mrf.mxu0 }
 0x21e   :  { %v1613_v21 = vpop.f32.mrf.mxu1  ;;  %v1537_v45 = vadd.f32 %v1536_v32, %v1375_v26 }
 0x21f   :  { %v1538_v40 = vpop.f32.mrf.mxu0  ;;  %v1614_v15 = vadd.f32 %v1613_v21, %v1452_v52 }
 0x220   :  { %v1615_v31 = vpop.f32.mrf.mxu1  ;;  %v1539_v53 = vadd.f32 %v1538_v40, %v1377_v13 }
 0x221   :  { %v1542_v11 = vpop.f32.mrf.mxu0  ;;  %v1616_v20 = vadd.f32 %v1615_v31, %v1454_v41 }
 0x222   :  { %v1543_v35 = vadd.f32 %v1542_v11, %v1381_v46  ;;  %v1619_v39 = vpop.f32.mrf.mxu1 }
 0x223   :  { %v1620_v37 = vadd.f32 %v1619_v39, %v1458_v24  ;;  %v1544_v30 = vpop.f32.mrf.mxu0 }
 0x224   :  { %v1629_v18 = vadd.f32 %v1543_v35, %v1537_v45  ;;  %v1545_v25 = vadd.f32 %v1544_v30, %v1383_v12  ;;  %v1621_v33 = vpop.f32.mrf.mxu1 }
 0x225   :  { %v1643_v56 = vadd.f32 %v1620_v37, %v1614_v15  ;;  %v1622_v28 = vadd.f32 %v1621_v33, %v1460_v63 }
 0x226   :  { %v1630_v10 = vrot.slane %v1629_v18, 4  ;;  %v1636_v38 = vadd.f32 %v1545_v25, %v1539_v53 }
 0x227   :  { %v1644_v50 = vrot.slane %v1643_v56, 4  ;;  %v1650_v8 = vadd.f32 %v1622_v28, %v1616_v20 }
 0x228   :  { %v1631_v49 = vadd.f32 %v1630_v10, %v1629_v18  ;;  %v1637_v34 = vrot.slane %v1636_v38, 4 }
 0x229   :  { %v1645_v2 = vadd.f32 %v1644_v50, %v1643_v56  ;;  %v1651_v54 = vrot.slane %v1650_v8, 4 }
 0x22a   :  { %v1632_v4 = vrot.slane %v1631_v49, 2  ;;  %v1638_v43 = vadd.f32 %v1637_v34, %v1636_v38 }
 0x22b   :  { %v1646_v27 = vrot.slane %v1645_v2, 2  ;;  %v1652_v60 = vadd.f32 %v1651_v54, %v1650_v8 }
 0x22c   :  { %v1633_v47 = vadd.f32 %v1632_v4, %v1631_v49  ;;  %v1639_v1 = vrot.slane %v1638_v43, 2 }
 0x22d   :  { %v1647_v7 = vadd.f32 %v1646_v27, %v1645_v2  ;;  %v1653_v59 = vrot.slane %v1652_v60, 2 }
 0x22e   :  { %v1634_v42 = vrot.slane %v1633_v47, 1  ;;  %v1640_v23 = vadd.f32 %v1639_v1, %v1638_v43 }
 0x22f   :  { %v1648_v3 = vrot.slane %v1647_v7, 1  ;;  %v1654_v57 = vadd.f32 %v1653_v59, %v1652_v60 }
 0x230   :  { %v1635_v0 = vadd.f32 %v1634_v42, %v1633_v47  ;;  %v1641_v58 = vrot.slane %v1640_v23, 1 }
 0x231   :  { %v1649_v48 = vadd.f32 %v1648_v3, %v1647_v7  ;;  %v1655_v62 = vrot.slane %v1654_v57, 1  ;;  %v1729_v3 = vpop.permute.xlu0 %1728 }
 0x232   :  { %v1658_v19 = vmul.f32 0.0625, %v1635_v0  ;;  %v1642_v17 = vadd.f32 %v1641_v58, %v1640_v23 }
 0x233   :  { %v1660_v16 = vmul.f32 0.0625, %v1649_v48  ;;  %v1656_v36 = vadd.f32 %v1655_v62, %v1654_v57  ;;  %v1734_v57 = vpop.permute.xlu1 %1733 }
 0x234   :  { %v1662_v44 = vsub.f32 %v1537_v45, %v1658_v19  ;;  %v1666_v22 = vsub.f32 %v1543_v35, %v1658_v19  ;;  %v1659_v51 = vmul.f32 0.0625, %v1642_v17  ;;  %v1770_v17 = vstv %s3987_s8  ;;  %s1948_s8 = smov [#allocation3]  }
 0x235   :  { %v3943_v6 = vsub.f32 %v1614_v15, %v1660_v16  ;;  %v3945_v5 = vsub.f32 %v1620_v37, %v1660_v16  ;;  %v1661_v55 = vmul.f32 0.0625, %v1656_v36  ;;  %s1800_s17 = sshll.u32 %s1948_s8, 4  ;;  %s1801_s17 = int_to_ptr.vmem [resolvable:$true] %s1800_s17 }
 0x236   :  { %v1670_v14 = vmul.f32 %v1662_v44, %v1662_v44  ;;  %v1674_v61 = vmul.f32 %v1666_v22, %v1666_v22  ;;  %v3947_v9 = vsub.f32 %v1539_v53, %v1659_v51  ;;  %v3949_v29 = vsub.f32 %v1545_v25, %v1659_v51  ;;  %s1924_s18 = scalar_lea.vmem %s1801_s17, 1024  ;;  %p1929_p1 = scmp.lt.s32.totalorder %s1801_s17, %s1801_s17 }
 0x237   :  { %v1672_v26 = vmul.f32 %v3943_v6, %v3943_v6  ;;  %v1676_v52 = vmul.f32 %v3945_v5, %v3945_v5  ;;  %v3955_v13 = vsub.f32 %v1616_v20, %v1661_v55  ;;  %v3957_v41 = vsub.f32 %v1622_v28, %v1661_v55  ;;  %p1925_p0 = scmp.ne.s32.totalorder %s1801_s17, %s1924_s18  ;;  %p1930_p2 = scmp.lt.s32.totalorder %s1924_s18, %s1924_s18 }
 0x238   :  { %v1678_v46 = vadd.f32 %v1674_v61, %v1670_v14  ;;  %v1671_v24 = vmul.f32 %v3947_v9, %v3947_v9  ;;  %v1675_v12 = vmul.f32 %v3949_v29, %v3949_v29 }
 0x239   :  { %v1692_v63 = vadd.f32 %v1676_v52, %v1672_v26  ;;  %v1673_v32 = vmul.f32 %v3955_v13, %v3955_v13  ;;  %v1677_v21 = vmul.f32 %v3957_v41, %v3957_v41  ;;  %v1747_v52 = vpop.permute.xlu0 %1746  ;;  %p1931_p3 = por %p1930_p2, %p1929_p1 }
 0x23a   :  { %v1679_v40 = vrot.slane %v1678_v46, 4  ;;  %v1685_v31 = vadd.f32 %v1675_v12, %v1671_v24 }
 0x23b   :  { %v1693_v11 = vrot.slane %v1692_v63, 4  ;;  %v1699_v45 = vadd.f32 %v1677_v21, %v1673_v32  ;;  %p1932_p4 = pnand %p1931_p3, %p1925_p0 }
 0x23c   :  { %v1680_v35 = vadd.f32 %v1679_v40, %v1678_v46  ;;  %v1686_v39 = vrot.slane %v1685_v31, 4  ;;  %v1752_v46 = vpop.permute.xlu1 %1751 }
 0x23d   :  { %v1694_v15 = vadd.f32 %v1693_v11, %v1692_v63  ;;  %v1700_v37 = vrot.slane %v1699_v45, 4 }
 0x23e   :  { %v1681_v30 = vrot.slane %v1680_v35, 2  ;;  %v1687_v53 = vadd.f32 %v1686_v39, %v1685_v31 }
 0x23f   :  { %v1695_v18 = vrot.slane %v1694_v15, 2  ;;  %v1701_v25 = vadd.f32 %v1700_v37, %v1699_v45 }
 0x240   :  { %v1682_v33 = vadd.f32 %v1681_v30, %v1680_v35  ;;  %v1688_v20 = vrot.slane %v1687_v53, 2 }
 0x241   :  { %v1696_v56 = vadd.f32 %v1695_v18, %v1694_v15  ;;  %v1702_v28 = vrot.slane %v1701_v25, 2 }
 0x242   :  { %v1683_v10 = vrot.slane %v1682_v33, 1  ;;  %v1689_v38 = vadd.f32 %v1688_v20, %v1687_v53 }
 0x243   :  { %v1697_v50 = vrot.slane %v1696_v56, 1  ;;  %v1703_v8 = vadd.f32 %v1702_v28, %v1701_v25 }
 0x244   :  { %v1684_v49 = vadd.f32 %v1683_v10, %v1682_v33  ;;  %v1690_v34 = vrot.slane %v1689_v38, 1 }
 0x245   :  { %v1698_v2 = vadd.f32 %v1697_v50, %v1696_v56  ;;  %v1704_v54 = vrot.slane %v1703_v8, 1 }
 0x246   :  { %v1706_v4 = vmul.f32 0.0625, %v1684_v49  ;;  %v1691_v43 = vadd.f32 %v1690_v34, %v1689_v38 }
 0x247   :  { %v1708_v27 = vmul.f32 0.0625, %v1698_v2  ;;  %v1705_v60 = vadd.f32 %v1704_v54, %v1703_v8 }
 0x248   :  { %v1710_v47 = vadd.f32 1e-05, %v1706_v4  ;;  %v1707_v1 = vmul.f32 0.0625, %v1691_v43 }
 0x249   :  { %v1712_v7 = vadd.f32 1e-05, %v1708_v27  ;;  %v1709_v59 = vmul.f32 0.0625, %v1705_v60 }
 0x24a   :  { %1912 = vrsqrt.f32 %v1710_v47  ;;  %v1711_v42 = vadd.f32 1e-05, %v1707_v1 }
 0x24b   :  { %1914 = vrsqrt.f32 %v1712_v7  ;;  %v1713_v23 = vadd.f32 1e-05, %v1709_v59 }
 0x24c   :  { %1916 = vrsqrt.f32 %v1711_v42 }
 0x24d   :  { %1918 = vrsqrt.f32 %v1713_v23 }
 0x257   :  { %v1913_v0 = vpop.eup %1912 }
 0x258   :  { %v1915_v58 = vpop.eup %1914  ;;  %v1718_v48 = vmul.f32 %v1913_v0, %v1662_v44  ;;  %v1722_v62 = vmul.f32 %v1913_v0, %v1666_v22 }
 0x259   :  { %v1917_v19 = vpop.eup %1916  ;;  %v1720_v16 = vmul.f32 %v1915_v58, %v3943_v6  ;;  %v1724_v36 = vmul.f32 %v1915_v58, %v3945_v5 }
 0x25a   :  { %v1919_v51 = vpop.eup %1918  ;;  %v1736_v55 = vmul.f32 %v1729_v3, %v1718_v48  ;;  %v1740_v14 = vmul.f32 %v1734_v57, %v1722_v62  ;;  %v1719_v61 = vmul.f32 %v1917_v19, %v3947_v9  ;;  %v1723_v26 = vmul.f32 %v1917_v19, %v3949_v29 }
 0x25b   :  { %v1738_v44 = vmul.f32 %v1729_v3, %v1720_v16  ;;  %v1742_v22 = vmul.f32 %v1734_v57, %v1724_v36  ;;  %v1721_v24 = vmul.f32 %v1919_v51, %v3955_v13  ;;  %v1725_v12 = vmul.f32 %v1919_v51, %v3957_v41 }
 0x25c   :  { %v1754_v63 = vadd.f32 %v1747_v52, %v1736_v55  ;;  %v1758_v32 = vadd.f32 %v1752_v46, %v1740_v14  ;;  %v1737_v6 = vmul.f32 %v1729_v3, %v1719_v61  ;;  %v1741_v21 = vmul.f32 %v1734_v57, %v1723_v26 }
 0x25d   :  { %v1756_v5 = vadd.f32 %v1747_v52, %v1738_v44  ;;  %v1760_v40 = vadd.f32 %v1752_v46, %v1742_v22  ;;  %v1739_v31 = vmul.f32 %v1729_v3, %v1721_v24  ;;  %v1743_v11 = vmul.f32 %v1734_v57, %v1725_v12 }
 0x25e   :  { %vm1762_vm10 = vcmp.ge.f32.partialorder %v1754_v63, 0.0  ;;  %vm1766_vm13 = vcmp.ge.f32.partialorder %v1758_v32, 0.0  ;;  %v1771_v9 = vmul.f32 %v1770_v17, %v1754_v63  ;;  %v1775_v29 = vmul.f32 %v1770_v17, %v1758_v32 }
 0x25f   :  { %vm1764_vm3 = vcmp.ge.f32.partialorder %v1756_v5, 0.0  ;;  %vm1768_vm12 = vcmp.ge.f32.partialorder %v1760_v40, 0.0  ;;  %v1773_v45 = vmul.f32 %v1770_v17, %v1756_v5  ;;  %v1777_v35 = vmul.f32 %v1770_v17, %v1760_v40 }
 0x260   :  { %v1779_v39 = vsel %vm1762_vm10, %v1754_v63, %v1771_v9  ;;  %v1783_v13 = vsel %vm1766_vm13, %v1758_v32, %v1775_v29  ;;  %v1755_v15 = vadd.f32 %v1747_v52, %v1737_v6  ;;  %v1759_v41 = vadd.f32 %v1752_v46, %v1741_v21 }
 0x261   :  { %1787 = vst [vmem:[#allocation3] sm:$0xff] %v1779_v39  ;;  %1791 = vst [vmem:[#allocation3 + $0x20] sm:$0xff] %v1783_v13  ;;  %v1781_v37 = vsel %vm1764_vm3, %v1756_v5, %v1773_v45  ;;  %v1785_v30 = vsel %vm1768_vm12, %v1760_v40, %v1777_v35  ;;  %v1757_v53 = vadd.f32 %v1747_v52, %v1739_v31 }
 0x262   :  { %v1761_v18 = vadd.f32 %v1752_v46, %v1743_v11  ;;  %1789 = vst [vmem:[#allocation3 + $0x10] sm:$0xff] %v1781_v37  ;;  %1793 = vst [vmem:[#allocation3 + $0x30] sm:$0xff] %v1785_v30  ;;  %vm1763_vm4 = vcmp.ge.f32.partialorder %v1755_v15, 0.0  ;;  %vm1767_vm5 = vcmp.ge.f32.partialorder %v1759_v41, 0.0  ;;  %v1772_v25 = vmul.f32 %v1770_v17, %v1755_v15 }
 0x263   :  { %v1776_v33 = vmul.f32 %v1770_v17, %v1759_v41  ;;  %vm1765_vm14 = vcmp.ge.f32.partialorder %v1757_v53, 0.0  ;;  %v1774_v20 = vmul.f32 %v1770_v17, %v1757_v53 }
 0x264   :  { %vm1769_vm11 = vcmp.ge.f32.partialorder %v1761_v18, 0.0  ;;  %v1778_v56 = vmul.f32 %v1770_v17, %v1761_v18  ;;  %v1780_v28 = vsel %vm1763_vm4, %v1755_v15, %v1772_v25 }
 0x265   :  { %v1784_v10 = vsel %vm1767_vm5, %v1759_v41, %v1776_v33  ;;  %1788 = vst [vmem:[#allocation3 + $0x8] sm:$0xff] %v1780_v28  ;;  %v1782_v38 = vsel %vm1765_vm14, %v1757_v53, %v1774_v20 }
 0x266   :  { %1792 = vst [vmem:[#allocation3 + $0x28] sm:$0xff] %v1784_v10  ;;  %v1786_v50 = vsel %vm1769_vm11, %v1761_v18, %v1778_v56  ;;  %1790 = vst [vmem:[#allocation3 + $0x18] sm:$0xff] %v1782_v38 }
 0x267   :  { %1794 = vst [vmem:[#allocation3 + $0x38] sm:$0xff] %v1786_v50 }
 0x268   :  { %1935 = shalt.err (!%p1932_p4)
}
 0x269   :  { %s1949_s19 = smov 512   ;;  %s1950_s2 = smov 32  }
 0x26a   :  { %1806 = dma.vmem_to_hbm [thread:$0]  %s1801_s17, 1024, %s3988_s9, [#allocation4], %s1949_s19, %s1949_s19, %s1950_s2  }
 0x26b   :  { %1944 = dma.done.wait [#allocation4], 1024  }
 0x26c   :  { %1945 = vsyncadd [#allocation4], 4294966272 }
 0x26d   :  { %1810 = vsyncpa [#allocation4], 1 }

</bundles_post_ra>
